<compile_context>
chip_gen: v7x
topology: tpu7x:2x2x1
jax: 0.10.0
libtpu: 0.0.40
codegen_flags: <defaults>
</compile_context>

<pallas_src>
import jax
import jax.numpy as jnp
from jax import lax
from jax.experimental import pallas as pl
from jax.experimental.pallas import tpu as pltpu


# --------------------------- fused LSTM + FC kernel ---------------------------
def fused_lstm_fc_kernel(x_ref,                # (T*B, E)  time-major flat embedded tokens
                         wih0_ref, whh0_ref,   # (E, 4H), (H, 4H)
                         b0_ref,               # (1, 4H)
                         w1_ref, b1_ref,       # (2H, 4H) stacked [W_ih1^T; W_hh1^T], (1, 4H)
                         fcw_ref, fcb_ref,     # (H, V), (1, V)
                         logits_ref,           # (B*T, V)  flat, batch-major rows (b*T + t)
                         hn_ref, cn_ref,       # (2, B, H) each
                         xh1_sc,               # VMEM (B, 2H): fused [h1_t, h2_{t-1}]
                         h2_all_sc):           # VMEM (B*T, H): all layer-2 hidden states
    """Gate order follows PyTorch nn.LSTM: [i, f, g, o]."""
    H = hn_ref.shape[-1]
    B = hn_ref.shape[1]
    T = x_ref.shape[0] // B

    # ---- hoisted, loop-invariant work -------------------------------------------------
    # Layer-0 input projection for ALL time steps as one batched MXU matmul (bias folded).
    xg_all = (jnp.dot(x_ref[...], wih0_ref[...], preferred_element_type=jnp.float32)
              + b0_ref[...])                               # (T*B, 4H)
    whh0 = whh0_ref[...]                                   # (H, 4H)
    w1 = w1_ref[...]                                       # (2H, 4H)
    b1 = jnp.broadcast_to(b1_ref[...], (B, 4 * H))         # broadcast hoisted out of loop

    def gates_split(g):
        i = jax.nn.sigmoid(g[:, 0 * H:1 * H])
        f = jax.nn.sigmoid(g[:, 1 * H:2 * H])
        gg = jnp.tanh(g[:, 2 * H:3 * H])
        o = jax.nn.sigmoid(g[:, 3 * H:4 * H])
        return i, f, gg, o

    h1 = jnp.zeros((B, H), jnp.float32)
    c1 = jnp.zeros((B, H), jnp.float32)
    h2 = jnp.zeros((B, H), jnp.float32)
    c2 = jnp.zeros((B, H), jnp.float32)
    xh1_sc[:, H:] = h2                                     # h2_{-1} = 0

    # ---- statically unrolled recurrence (T is small) ----------------------------------
    # TODO(synk): for long sequences use lax.fori_loop with dynamic leading-dim indexing.
    for t in range(T):
        # layer 0: precomputed x-projection + one h @ W_hh matmul
        g0 = (xg_all[t * B:(t + 1) * B, :]
              + jnp.dot(h1, whh0, preferred_element_type=jnp.float32))
        i, f, g, o = gates_split(g0)
        c1 = f * c1 + i * g
        h1 = o * jnp.tanh(c1)

        # inter-layer dropout(0.3): identity in eval mode

        # layer 1: fused [h1_t, h2_{t-1}] @ [[W_ih1^T]; [W_hh1^T]]  (single MXU matmul)
        xh1_sc[:, :H] = h1
        g1 = jnp.dot(xh1_sc[...], w1, preferred_element_type=jnp.float32) + b1
        i, f, g, o = gates_split(g1)
        c2 = f * c2 + i * g
        h2 = o * jnp.tanh(c2)
        xh1_sc[:, H:] = h2

        # stash h2_t in batch-major rows (b*T + t) so the flat FC output
        # reshapes to (B, T, V) for free (no transpose).
        for b in range(B):
            h2_all_sc[b * T + t:b * T + t + 1, :] = h2[b:b + 1, :]

    hn_ref[0] = h1
    hn_ref[1] = h2
    cn_ref[0] = c1
    cn_ref[1] = c2

    # final dropout(0.5): identity in eval mode
    # Batched FC over all B*T rows: one MXU matmul + one lane-dense store.
    logits_ref[...] = (jnp.dot(h2_all_sc[...], fcw_ref[...],
                               preferred_element_type=jnp.float32)
                       + fcb_ref[...])


# ------------------------------ full forward pass -----------------------------
def lstm_text_generator_forward(params, x_tokens):
    """x_tokens: [B, T] int32 ids. Returns (logits [B, T, V], (h_n, c_n))."""
    B, T = x_tokens.shape
    l0, l1 = params["lstm"]          # fused kernel is specialized to num_layers == 2
    H = params["fc_w_t"].shape[0]
    V = params["fc_w_t"].shape[1]
    E = params["embedding"].shape[1]

    # Time-major embedding gather -> [T, B, E] (avoids an XLA transpose of the
    # activation tensor); flatten to (T*B, E) is a free row-major reshape.
    # TODO(synk): fuse the gather into the kernel via scalar-prefetched token ids for
    # production vocab/embedding sizes.
    x_flat = jnp.take(params["embedding"], x_tokens.T, axis=0).reshape(T * B, E)

    # Stacked layer-1 weight for the fused [h1, h2] matmul (pre-stack offline in prod).
    w1_stacked = jnp.concatenate([l1["w_ih_t"], l1["w_hh_t"]], axis=0)   # (2H, 4H)

    logits_flat, h_n, c_n = pl.pallas_call(
        fused_lstm_fc_kernel,
        out_shape=(
            jax.ShapeDtypeStruct((B * T, V), jnp.float32),
            jax.ShapeDtypeStruct((2, B, H), jnp.float32),
            jax.ShapeDtypeStruct((2, B, H), jnp.float32),
        ),
        scratch_shapes=[
            pltpu.VMEM((B, 2 * H), jnp.float32),     # fused layer-1 input [h1, h2]
            pltpu.VMEM((B * T, H), jnp.float32),     # all layer-2 hidden states
        ],
    )(x_flat, l0["w_ih_t"], l0["w_hh_t"], l0["bias"],
      w1_stacked, l1["bias"], params["fc_w_t"], params["fc_b"])

    logits = logits_flat.reshape(B, T, V)            # free (row-major) reshape
    return logits, (h_n, c_n)


# ------------------------------- pure-JAX reference ----------------------------
def lstm_layer_ref(x_bte, w_ih_t, w_hh_t, bias_2d):
    B, T, E = x_bte.shape
    H = w_hh_t.shape[0]

    def step(carry, x_t):
        h, c = carry
        gates = x_t @ w_ih_t + h @ w_hh_t + bias_2d
        i = jax.nn.sigmoid(gates[:, :H])
        f = jax.nn.sigmoid(gates[:, H:2 * H])
        g = jnp.tanh(gates[:, 2 * H:3 * H])
        o = jax.nn.sigmoid(gates[:, 3 * H:])
        c = f * c + i * g
        h = o * jnp.tanh(c)
        return (h, c), h

    init = (jnp.zeros((B, H), jnp.float32), jnp.zeros((B, H), jnp.float32))
    (hn, cn), outs = lax.scan(step, init, jnp.swapaxes(x_bte, 0, 1))
    return jnp.swapaxes(outs, 0, 1), hn, cn


def forward_ref(params, x_tokens):
    embedded = jnp.take(params["embedding"], x_tokens, axis=0)
    layer_in = embedded
    hs, cs = [], []
    for layer in params["lstm"]:
        layer_in, hn, cn = lstm_layer_ref(layer_in, layer["w_ih_t"],
                                          layer["w_hh_t"], layer["bias"])
        hs.append(hn)
        cs.append(cn)
    B, T, H = layer_in.shape
    logits = layer_in.reshape(B * T, H) @ params["fc_w_t"] + params["fc_b"]
    return logits.reshape(B, T, -1), (jnp.stack(hs), jnp.stack(cs))


# ------------------------------------ main -------------------------------------
if __name__ == "__main__":
    # Small, forward-consistent shapes.
    VOCAB, EMB, HID, NUM_LAYERS = 64, 32, 32, 2
    B, T = 2, 8

    key = jax.random.PRNGKey(0)
    keys = jax.random.split(key, 16)
    k = 1.0 / jnp.sqrt(HID)

    lstm_params = []
    ki = 1
    for layer in range(NUM_LAYERS):
        in_dim = EMB if layer == 0 else HID
        w_ih = jax.random.uniform(keys[ki + 0], (4 * HID, in_dim), jnp.float32, -k, k)
        w_hh = jax.random.uniform(keys[ki + 1], (4 * HID, HID), jnp.float32, -k, k)
        b_ih = jax.random.uniform(keys[ki + 2], (4 * HID,), jnp.float32, -k, k)
        b_hh = jax.random.uniform(keys[ki + 3], (4 * HID,), jnp.float32, -k, k)
        ki += 4
        lstm_params.append({
            "w_ih_t": w_ih.T,                             # [in_dim, 4H]
            "w_hh_t": w_hh.T,                             # [H, 4H]
            "bias": (b_ih + b_hh).reshape(1, 4 * HID),    # [1, 4H]
        })

    params = {
        "embedding": jax.random.normal(keys[0], (VOCAB, EMB), jnp.float32),
        "lstm": lstm_params,
        "fc_w_t": jax.random.uniform(keys[ki], (HID, VOCAB), jnp.float32, -k, k),
        "fc_b": jax.random.uniform(keys[ki + 1], (1, VOCAB), jnp.float32, -k, k),
    }

    x_tokens = jax.random.randint(keys[ki + 2], (B, T), 0, VOCAB, dtype=jnp.int32)

    logits, (h_n, c_n) = lstm_text_generator_forward(params, x_tokens)
    jax.block_until_ready((logits, h_n, c_n))

    # Correctness check against pure-JAX reference.
    ref_logits, (ref_h, ref_c) = forward_ref(params, x_tokens)
    assert logits.shape == (B, T, VOCAB)
    assert h_n.shape == (NUM_LAYERS, B, HID) and c_n.shape == (NUM_LAYERS, B, HID)
    assert jnp.allclose(logits, ref_logits, atol=1e-4, rtol=1e-4)
    assert jnp.allclose(h_n, ref_h, atol=1e-4, rtol=1e-4)
    assert jnp.allclose(c_n, ref_c, atol=1e-4, rtol=1e-4)

    print("KERNEL_OK")
</pallas_src>

<mosaic_0001>
module attributes {stable_mosaic.version = 11 : i64} {
  func.func @fused_lstm_fc_kernel(%arg0: memref<16x32xf32, #tpu.memory_space<vmem>>, %arg1: memref<32x128xf32, #tpu.memory_space<vmem>>, %arg2: memref<32x128xf32, #tpu.memory_space<vmem>>, %arg3: memref<1x128xf32, #tpu.memory_space<vmem>>, %arg4: memref<64x128xf32, #tpu.memory_space<vmem>>, %arg5: memref<1x128xf32, #tpu.memory_space<vmem>>, %arg6: memref<32x64xf32, #tpu.memory_space<vmem>>, %arg7: memref<1x64xf32, #tpu.memory_space<vmem>>, %arg8: memref<16x64xf32, #tpu.memory_space<vmem>>, %arg9: memref<2x2x32xf32, #tpu.memory_space<vmem>>, %arg10: memref<2x2x32xf32, #tpu.memory_space<vmem>>, %arg11: memref<2x64xf32, #tpu.memory_space<vmem>>, %arg12: memref<16x32xf32, #tpu.memory_space<vmem>>) attributes {dimension_semantics = [], scalar_prefetch = 0 : i64, scratch_operands = 2 : i64, tpu.core_type = #tpu.core_type<tc>} {
    %c0 = arith.constant 0 : index
    %c0_0 = arith.constant 0 : index
    %0 = vector.load %arg0[%c0, %c0_0] : memref<16x32xf32, #tpu.memory_space<vmem>>, vector<16x32xf32>
    %c0_1 = arith.constant 0 : index
    %c0_2 = arith.constant 0 : index
    %1 = vector.load %arg1[%c0_1, %c0_2] : memref<32x128xf32, #tpu.memory_space<vmem>>, vector<32x128xf32>
    %cst = arith.constant dense<0.000000e+00> : vector<16x128xf32>
    %2 = tpu.matmul %0, %1, %cst {dimension_numbers = #tpu.dot_dimension_numbers<[1], [0], [0], [1], [0, 0, 1, 1], [], []>} : vector<16x32xf32>, vector<32x128xf32>, vector<16x128xf32> -> vector<16x128xf32>
    %c0_3 = arith.constant 0 : index
    %c0_4 = arith.constant 0 : index
    %3 = vector.load %arg3[%c0_3, %c0_4] : memref<1x128xf32, #tpu.memory_space<vmem>>, vector<1x128xf32>
    %4 = vector.broadcast %3 : vector<1x128xf32> to vector<16x128xf32>
    %5 = arith.addf %2, %4 : vector<16x128xf32>
    %c0_5 = arith.constant 0 : index
    %c0_6 = arith.constant 0 : index
    %6 = vector.load %arg2[%c0_5, %c0_6] : memref<32x128xf32, #tpu.memory_space<vmem>>, vector<32x128xf32>
    %c0_7 = arith.constant 0 : index
    %c0_8 = arith.constant 0 : index
    %7 = vector.load %arg4[%c0_7, %c0_8] : memref<64x128xf32, #tpu.memory_space<vmem>>, vector<64x128xf32>
    %c0_9 = arith.constant 0 : index
    %c0_10 = arith.constant 0 : index
    %8 = vector.load %arg5[%c0_9, %c0_10] : memref<1x128xf32, #tpu.memory_space<vmem>>, vector<1x128xf32>
    %9 = vector.shape_cast %8 : vector<1x128xf32> to vector<1x128xf32>
    %10 = vector.broadcast %9 : vector<1x128xf32> to vector<2x128xf32>
    %cst_11 = arith.constant 0.000000e+00 : f32
    %11 = vector.broadcast %cst_11 : f32 to vector<2x32xf32>
    %cst_12 = arith.constant 0.000000e+00 : f32
    %12 = vector.broadcast %cst_12 : f32 to vector<2x32xf32>
    %cst_13 = arith.constant 0.000000e+00 : f32
    %13 = vector.broadcast %cst_13 : f32 to vector<2x32xf32>
    %cst_14 = arith.constant 0.000000e+00 : f32
    %14 = vector.broadcast %cst_14 : f32 to vector<2x32xf32>
    %c0_15 = arith.constant 0 : index
    %c32 = arith.constant 32 : index
    %15 = vector.load %arg11[%c0_15, %c32] : memref<2x64xf32, #tpu.memory_space<vmem>>, vector<2x32xf32>
    tpu.vector_store %arg11[%c0_15, %c32], %13 {strides = array<i32>} : memref<2x64xf32, #tpu.memory_space<vmem>>, vector<2x32xf32>,
    %16 = vector.extract_strided_slice %5 {offsets = [0, 0], sizes = [2, 128], strides = [1, 1]} : vector<16x128xf32> to vector<2x128xf32>
    %cst_16 = arith.constant dense<0.000000e+00> : vector<2x128xf32>
    %17 = tpu.matmul %11, %6, %cst_16 {dimension_numbers = #tpu.dot_dimension_numbers<[1], [0], [0], [1], [0, 0, 1, 1], [], []>} : vector<2x32xf32>, vector<32x128xf32>, vector<2x128xf32> -> vector<2x128xf32>
    %18 = arith.addf %16, %17 : vector<2x128xf32>
    %19 = vector.extract_strided_slice %18 {offsets = [0, 0], sizes = [2, 32], strides = [1, 1]} : vector<2x128xf32> to vector<2x32xf32>
    %20 = arith.negf %19 : vector<2x32xf32>
    %21 = math.exp %20 : vector<2x32xf32>
    %cst_17 = arith.constant 1.000000e+00 : f32
    %22 = vector.broadcast %cst_17 : f32 to vector<2x32xf32>
    %23 = arith.addf %22, %21 : vector<2x32xf32>
    %24 = arith.divf %22, %23 : vector<2x32xf32>
    %25 = vector.extract_strided_slice %18 {offsets = [0, 32], sizes = [2, 32], strides = [1, 1]} : vector<2x128xf32> to vector<2x32xf32>
    %26 = arith.negf %25 : vector<2x32xf32>
    %27 = math.exp %26 : vector<2x32xf32>
    %cst_18 = arith.constant 1.000000e+00 : f32
    %28 = vector.broadcast %cst_18 : f32 to vector<2x32xf32>
    %29 = arith.addf %28, %27 : vector<2x32xf32>
    %30 = arith.divf %28, %29 : vector<2x32xf32>
    %31 = vector.extract_strided_slice %18 {offsets = [0, 64], sizes = [2, 32], strides = [1, 1]} : vector<2x128xf32> to vector<2x32xf32>
    %32 = math.tanh %31 : vector<2x32xf32>
    %33 = vector.extract_strided_slice %18 {offsets = [0, 96], sizes = [2, 32], strides = [1, 1]} : vector<2x128xf32> to vector<2x32xf32>
    %34 = arith.negf %33 : vector<2x32xf32>
    %35 = math.exp %34 : vector<2x32xf32>
    %cst_19 = arith.constant 1.000000e+00 : f32
    %36 = vector.broadcast %cst_19 : f32 to vector<2x32xf32>
    %37 = arith.addf %36, %35 : vector<2x32xf32>
    %38 = arith.divf %36, %37 : vector<2x32xf32>
    %39 = arith.mulf %30, %12 : vector<2x32xf32>
    %40 = arith.mulf %24, %32 : vector<2x32xf32>
    %41 = arith.addf %39, %40 : vector<2x32xf32>
    %42 = math.tanh %41 : vector<2x32xf32>
    %43 = arith.mulf %38, %42 : vector<2x32xf32>
    %c0_20 = arith.constant 0 : index
    %c0_21 = arith.constant 0 : index
    %44 = vector.load %arg11[%c0_20, %c0_21] : memref<2x64xf32, #tpu.memory_space<vmem>>, vector<2x32xf32>
    tpu.vector_store %arg11[%c0_20, %c0_21], %43 {strides = array<i32>} : memref<2x64xf32, #tpu.memory_space<vmem>>, vector<2x32xf32>,
    %c0_22 = arith.constant 0 : index
    %c0_23 = arith.constant 0 : index
    %45 = vector.load %arg11[%c0_22, %c0_23] : memref<2x64xf32, #tpu.memory_space<vmem>>, vector<2x64xf32>
    %cst_24 = arith.constant dense<0.000000e+00> : vector<2x128xf32>
    %46 = tpu.matmul %45, %7, %cst_24 {dimension_numbers = #tpu.dot_dimension_numbers<[1], [0], [0], [1], [0, 0, 1, 1], [], []>} : vector<2x64xf32>, vector<64x128xf32>, vector<2x128xf32> -> vector<2x128xf32>
    %47 = arith.addf %46, %10 : vector<2x128xf32>
    %48 = vector.extract_strided_slice %47 {offsets = [0, 0], sizes = [2, 32], strides = [1, 1]} : vector<2x128xf32> to vector<2x32xf32>
    %49 = arith.negf %48 : vector<2x32xf32>
    %50 = math.exp %49 : vector<2x32xf32>
    %cst_25 = arith.constant 1.000000e+00 : f32
    %51 = vector.broadcast %cst_25 : f32 to vector<2x32xf32>
    %52 = arith.addf %51, %50 : vector<2x32xf32>
    %53 = arith.divf %51, %52 : vector<2x32xf32>
    %54 = vector.extract_strided_slice %47 {offsets = [0, 32], sizes = [2, 32], strides = [1, 1]} : vector<2x128xf32> to vector<2x32xf32>
    %55 = arith.negf %54 : vector<2x32xf32>
    %56 = math.exp %55 : vector<2x32xf32>
    %cst_26 = arith.constant 1.000000e+00 : f32
    %57 = vector.broadcast %cst_26 : f32 to vector<2x32xf32>
    %58 = arith.addf %57, %56 : vector<2x32xf32>
    %59 = arith.divf %57, %58 : vector<2x32xf32>
    %60 = vector.extract_strided_slice %47 {offsets = [0, 64], sizes = [2, 32], strides = [1, 1]} : vector<2x128xf32> to vector<2x32xf32>
    %61 = math.tanh %60 : vector<2x32xf32>
    %62 = vector.extract_strided_slice %47 {offsets = [0, 96], sizes = [2, 32], strides = [1, 1]} : vector<2x128xf32> to vector<2x32xf32>
    %63 = arith.negf %62 : vector<2x32xf32>
    %64 = math.exp %63 : vector<2x32xf32>
    %cst_27 = arith.constant 1.000000e+00 : f32
    %65 = vector.broadcast %cst_27 : f32 to vector<2x32xf32>
    %66 = arith.addf %65, %64 : vector<2x32xf32>
    %67 = arith.divf %65, %66 : vector<2x32xf32>
    %68 = arith.mulf %59, %14 : vector<2x32xf32>
    %69 = arith.mulf %53, %61 : vector<2x32xf32>
    %70 = arith.addf %68, %69 : vector<2x32xf32>
    %71 = math.tanh %70 : vector<2x32xf32>
    %72 = arith.mulf %67, %71 : vector<2x32xf32>
    %c0_28 = arith.constant 0 : index
    %c32_29 = arith.constant 32 : index
    %73 = vector.load %arg11[%c0_28, %c32_29] : memref<2x64xf32, #tpu.memory_space<vmem>>, vector<2x32xf32>
    tpu.vector_store %arg11[%c0_28, %c32_29], %72 {strides = array<i32>} : memref<2x64xf32, #tpu.memory_space<vmem>>, vector<2x32xf32>,
    %74 = vector.extract_strided_slice %72 {offsets = [0, 0], sizes = [1, 32], strides = [1, 1]} : vector<2x32xf32> to vector<1x32xf32>
    %c0_30 = arith.constant 0 : index
    %c0_31 = arith.constant 0 : index
    %75 = vector.load %arg12[%c0_30, %c0_31] : memref<16x32xf32, #tpu.memory_space<vmem>>, vector<1x32xf32>
    tpu.vector_store %arg12[%c0_30, %c0_31], %74 {strides = array<i32>} : memref<16x32xf32, #tpu.memory_space<vmem>>, vector<1x32xf32>,
    %76 = vector.extract_strided_slice %72 {offsets = [1, 0], sizes = [1, 32], strides = [1, 1]} : vector<2x32xf32> to vector<1x32xf32>
    %c8 = arith.constant 8 : index
    %c0_32 = arith.constant 0 : index
    %77 = vector.load %arg12[%c8, %c0_32] : memref<16x32xf32, #tpu.memory_space<vmem>>, vector<1x32xf32>
    tpu.vector_store %arg12[%c8, %c0_32], %76 {strides = array<i32>} : memref<16x32xf32, #tpu.memory_space<vmem>>, vector<1x32xf32>,
    %78 = vector.extract_strided_slice %5 {offsets = [2, 0], sizes = [2, 128], strides = [1, 1]} : vector<16x128xf32> to vector<2x128xf32>
    %cst_33 = arith.constant dense<0.000000e+00> : vector<2x128xf32>
    %79 = tpu.matmul %43, %6, %cst_33 {dimension_numbers = #tpu.dot_dimension_numbers<[1], [0], [0], [1], [0, 0, 1, 1], [], []>} : vector<2x32xf32>, vector<32x128xf32>, vector<2x128xf32> -> vector<2x128xf32>
    %80 = arith.addf %78, %79 : vector<2x128xf32>
    %81 = vector.extract_strided_slice %80 {offsets = [0, 0], sizes = [2, 32], strides = [1, 1]} : vector<2x128xf32> to vector<2x32xf32>
    %82 = arith.negf %81 : vector<2x32xf32>
    %83 = math.exp %82 : vector<2x32xf32>
    %cst_34 = arith.constant 1.000000e+00 : f32
    %84 = vector.broadcast %cst_34 : f32 to vector<2x32xf32>
    %85 = arith.addf %84, %83 : vector<2x32xf32>
    %86 = arith.divf %84, %85 : vector<2x32xf32>
    %87 = vector.extract_strided_slice %80 {offsets = [0, 32], sizes = [2, 32], strides = [1, 1]} : vector<2x128xf32> to vector<2x32xf32>
    %88 = arith.negf %87 : vector<2x32xf32>
    %89 = math.exp %88 : vector<2x32xf32>
    %cst_35 = arith.constant 1.000000e+00 : f32
    %90 = vector.broadcast %cst_35 : f32 to vector<2x32xf32>
    %91 = arith.addf %90, %89 : vector<2x32xf32>
    %92 = arith.divf %90, %91 : vector<2x32xf32>
    %93 = vector.extract_strided_slice %80 {offsets = [0, 64], sizes = [2, 32], strides = [1, 1]} : vector<2x128xf32> to vector<2x32xf32>
    %94 = math.tanh %93 : vector<2x32xf32>
    %95 = vector.extract_strided_slice %80 {offsets = [0, 96], sizes = [2, 32], strides = [1, 1]} : vector<2x128xf32> to vector<2x32xf32>
    %96 = arith.negf %95 : vector<2x32xf32>
    %97 = math.exp %96 : vector<2x32xf32>
    %cst_36 = arith.constant 1.000000e+00 : f32
    %98 = vector.broadcast %cst_36 : f32 to vector<2x32xf32>
    %99 = arith.addf %98, %97 : vector<2x32xf32>
    %100 = arith.divf %98, %99 : vector<2x32xf32>
    %101 = arith.mulf %92, %41 : vector<2x32xf32>
    %102 = arith.mulf %86, %94 : vector<2x32xf32>
    %103 = arith.addf %101, %102 : vector<2x32xf32>
    %104 = math.tanh %103 : vector<2x32xf32>
    %105 = arith.mulf %100, %104 : vector<2x32xf32>
    %c0_37 = arith.constant 0 : index
    %c0_38 = arith.constant 0 : index
    %106 = vector.load %arg11[%c0_37, %c0_38] : memref<2x64xf32, #tpu.memory_space<vmem>>, vector<2x32xf32>
    tpu.vector_store %arg11[%c0_37, %c0_38], %105 {strides = array<i32>} : memref<2x64xf32, #tpu.memory_space<vmem>>, vector<2x32xf32>,
    %c0_39 = arith.constant 0 : index
    %c0_40 = arith.constant 0 : index
    %107 = vector.load %arg11[%c0_39, %c0_40] : memref<2x64xf32, #tpu.memory_space<vmem>>, vector<2x64xf32>
    %cst_41 = arith.constant dense<0.000000e+00> : vector<2x128xf32>
    %108 = tpu.matmul %107, %7, %cst_41 {dimension_numbers = #tpu.dot_dimension_numbers<[1], [0], [0], [1], [0, 0, 1, 1], [], []>} : vector<2x64xf32>, vector<64x128xf32>, vector<2x128xf32> -> vector<2x128xf32>
    %109 = arith.addf %108, %10 : vector<2x128xf32>
    %110 = vector.extract_strided_slice %109 {offsets = [0, 0], sizes = [2, 32], strides = [1, 1]} : vector<2x128xf32> to vector<2x32xf32>
    %111 = arith.negf %110 : vector<2x32xf32>
    %112 = math.exp %111 : vector<2x32xf32>
    %cst_42 = arith.constant 1.000000e+00 : f32
    %113 = vector.broadcast %cst_42 : f32 to vector<2x32xf32>
    %114 = arith.addf %113, %112 : vector<2x32xf32>
    %115 = arith.divf %113, %114 : vector<2x32xf32>
    %116 = vector.extract_strided_slice %109 {offsets = [0, 32], sizes = [2, 32], strides = [1, 1]} : vector<2x128xf32> to vector<2x32xf32>
    %117 = arith.negf %116 : vector<2x32xf32>
    %118 = math.exp %117 : vector<2x32xf32>
    %cst_43 = arith.constant 1.000000e+00 : f32
    %119 = vector.broadcast %cst_43 : f32 to vector<2x32xf32>
    %120 = arith.addf %119, %118 : vector<2x32xf32>
    %121 = arith.divf %119, %120 : vector<2x32xf32>
    %122 = vector.extract_strided_slice %109 {offsets = [0, 64], sizes = [2, 32], strides = [1, 1]} : vector<2x128xf32> to vector<2x32xf32>
    %123 = math.tanh %122 : vector<2x32xf32>
    %124 = vector.extract_strided_slice %109 {offsets = [0, 96], sizes = [2, 32], strides = [1, 1]} : vector<2x128xf32> to vector<2x32xf32>
    %125 = arith.negf %124 : vector<2x32xf32>
    %126 = math.exp %125 : vector<2x32xf32>
    %cst_44 = arith.constant 1.000000e+00 : f32
    %127 = vector.broadcast %cst_44 : f32 to vector<2x32xf32>
    %128 = arith.addf %127, %126 : vector<2x32xf32>
    %129 = arith.divf %127, %128 : vector<2x32xf32>
    %130 = arith.mulf %121, %70 : vector<2x32xf32>
    %131 = arith.mulf %115, %123 : vector<2x32xf32>
    %132 = arith.addf %130, %131 : vector<2x32xf32>
    %133 = math.tanh %132 : vector<2x32xf32>
    %134 = arith.mulf %129, %133 : vector<2x32xf32>
    %c0_45 = arith.constant 0 : index
    %c32_46 = arith.constant 32 : index
    %135 = vector.load %arg11[%c0_45, %c32_46] : memref<2x64xf32, #tpu.memory_space<vmem>>, vector<2x32xf32>
    tpu.vector_store %arg11[%c0_45, %c32_46], %134 {strides = array<i32>} : memref<2x64xf32, #tpu.memory_space<vmem>>, vector<2x32xf32>,
    %136 = vector.extract_strided_slice %134 {offsets = [0, 0], sizes = [1, 32], strides = [1, 1]} : vector<2x32xf32> to vector<1x32xf32>
    %c1 = arith.constant 1 : index
    %c0_47 = arith.constant 0 : index
    %137 = vector.load %arg12[%c1, %c0_47] : memref<16x32xf32, #tpu.memory_space<vmem>>, vector<1x32xf32>
    tpu.vector_store %arg12[%c1, %c0_47], %136 {strides = array<i32>} : memref<16x32xf32, #tpu.memory_space<vmem>>, vector<1x32xf32>,
    %138 = vector.extract_strided_slice %134 {offsets = [1, 0], sizes = [1, 32], strides = [1, 1]} : vector<2x32xf32> to vector<1x32xf32>
    %c9 = arith.constant 9 : index
    %c0_48 = arith.constant 0 : index
    %139 = vector.load %arg12[%c9, %c0_48] : memref<16x32xf32, #tpu.memory_space<vmem>>, vector<1x32xf32>
    tpu.vector_store %arg12[%c9, %c0_48], %138 {strides = array<i32>} : memref<16x32xf32, #tpu.memory_space<vmem>>, vector<1x32xf32>,
    %140 = vector.extract_strided_slice %5 {offsets = [4, 0], sizes = [2, 128], strides = [1, 1]} : vector<16x128xf32> to vector<2x128xf32>
    %cst_49 = arith.constant dense<0.000000e+00> : vector<2x128xf32>
    %141 = tpu.matmul %105, %6, %cst_49 {dimension_numbers = #tpu.dot_dimension_numbers<[1], [0], [0], [1], [0, 0, 1, 1], [], []>} : vector<2x32xf32>, vector<32x128xf32>, vector<2x128xf32> -> vector<2x128xf32>
    %142 = arith.addf %140, %141 : vector<2x128xf32>
    %143 = vector.extract_strided_slice %142 {offsets = [0, 0], sizes = [2, 32], strides = [1, 1]} : vector<2x128xf32> to vector<2x32xf32>
    %144 = arith.negf %143 : vector<2x32xf32>
    %145 = math.exp %144 : vector<2x32xf32>
    %cst_50 = arith.constant 1.000000e+00 : f32
    %146 = vector.broadcast %cst_50 : f32 to vector<2x32xf32>
    %147 = arith.addf %146, %145 : vector<2x32xf32>
    %148 = arith.divf %146, %147 : vector<2x32xf32>
    %149 = vector.extract_strided_slice %142 {offsets = [0, 32], sizes = [2, 32], strides = [1, 1]} : vector<2x128xf32> to vector<2x32xf32>
    %150 = arith.negf %149 : vector<2x32xf32>
    %151 = math.exp %150 : vector<2x32xf32>
    %cst_51 = arith.constant 1.000000e+00 : f32
    %152 = vector.broadcast %cst_51 : f32 to vector<2x32xf32>
    %153 = arith.addf %152, %151 : vector<2x32xf32>
    %154 = arith.divf %152, %153 : vector<2x32xf32>
    %155 = vector.extract_strided_slice %142 {offsets = [0, 64], sizes = [2, 32], strides = [1, 1]} : vector<2x128xf32> to vector<2x32xf32>
    %156 = math.tanh %155 : vector<2x32xf32>
    %157 = vector.extract_strided_slice %142 {offsets = [0, 96], sizes = [2, 32], strides = [1, 1]} : vector<2x128xf32> to vector<2x32xf32>
    %158 = arith.negf %157 : vector<2x32xf32>
    %159 = math.exp %158 : vector<2x32xf32>
    %cst_52 = arith.constant 1.000000e+00 : f32
    %160 = vector.broadcast %cst_52 : f32 to vector<2x32xf32>
    %161 = arith.addf %160, %159 : vector<2x32xf32>
    %162 = arith.divf %160, %161 : vector<2x32xf32>
    %163 = arith.mulf %154, %103 : vector<2x32xf32>
    %164 = arith.mulf %148, %156 : vector<2x32xf32>
    %165 = arith.addf %163, %164 : vector<2x32xf32>
    %166 = math.tanh %165 : vector<2x32xf32>
    %167 = arith.mulf %162, %166 : vector<2x32xf32>
    %c0_53 = arith.constant 0 : index
    %c0_54 = arith.constant 0 : index
    %168 = vector.load %arg11[%c0_53, %c0_54] : memref<2x64xf32, #tpu.memory_space<vmem>>, vector<2x32xf32>
    tpu.vector_store %arg11[%c0_53, %c0_54], %167 {strides = array<i32>} : memref<2x64xf32, #tpu.memory_space<vmem>>, vector<2x32xf32>,
    %c0_55 = arith.constant 0 : index
    %c0_56 = arith.constant 0 : index
    %169 = vector.load %arg11[%c0_55, %c0_56] : memref<2x64xf32, #tpu.memory_space<vmem>>, vector<2x64xf32>
    %cst_57 = arith.constant dense<0.000000e+00> : vector<2x128xf32>
    %170 = tpu.matmul %169, %7, %cst_57 {dimension_numbers = #tpu.dot_dimension_numbers<[1], [0], [0], [1], [0, 0, 1, 1], [], []>} : vector<2x64xf32>, vector<64x128xf32>, vector<2x128xf32> -> vector<2x128xf32>
    %171 = arith.addf %170, %10 : vector<2x128xf32>
    %172 = vector.extract_strided_slice %171 {offsets = [0, 0], sizes = [2, 32], strides = [1, 1]} : vector<2x128xf32> to vector<2x32xf32>
    %173 = arith.negf %172 : vector<2x32xf32>
    %174 = math.exp %173 : vector<2x32xf32>
    %cst_58 = arith.constant 1.000000e+00 : f32
    %175 = vector.broadcast %cst_58 : f32 to vector<2x32xf32>
    %176 = arith.addf %175, %174 : vector<2x32xf32>
    %177 = arith.divf %175, %176 : vector<2x32xf32>
    %178 = vector.extract_strided_slice %171 {offsets = [0, 32], sizes = [2, 32], strides = [1, 1]} : vector<2x128xf32> to vector<2x32xf32>
    %179 = arith.negf %178 : vector<2x32xf32>
    %180 = math.exp %179 : vector<2x32xf32>
    %cst_59 = arith.constant 1.000000e+00 : f32
    %181 = vector.broadcast %cst_59 : f32 to vector<2x32xf32>
    %182 = arith.addf %181, %180 : vector<2x32xf32>
    %183 = arith.divf %181, %182 : vector<2x32xf32>
    %184 = vector.extract_strided_slice %171 {offsets = [0, 64], sizes = [2, 32], strides = [1, 1]} : vector<2x128xf32> to vector<2x32xf32>
    %185 = math.tanh %184 : vector<2x32xf32>
    %186 = vector.extract_strided_slice %171 {offsets = [0, 96], sizes = [2, 32], strides = [1, 1]} : vector<2x128xf32> to vector<2x32xf32>
    %187 = arith.negf %186 : vector<2x32xf32>
    %188 = math.exp %187 : vector<2x32xf32>
    %cst_60 = arith.constant 1.000000e+00 : f32
    %189 = vector.broadcast %cst_60 : f32 to vector<2x32xf32>
    %190 = arith.addf %189, %188 : vector<2x32xf32>
    %191 = arith.divf %189, %190 : vector<2x32xf32>
    %192 = arith.mulf %183, %132 : vector<2x32xf32>
    %193 = arith.mulf %177, %185 : vector<2x32xf32>
    %194 = arith.addf %192, %193 : vector<2x32xf32>
    %195 = math.tanh %194 : vector<2x32xf32>
    %196 = arith.mulf %191, %195 : vector<2x32xf32>
    %c0_61 = arith.constant 0 : index
    %c32_62 = arith.constant 32 : index
    %197 = vector.load %arg11[%c0_61, %c32_62] : memref<2x64xf32, #tpu.memory_space<vmem>>, vector<2x32xf32>
    tpu.vector_store %arg11[%c0_61, %c32_62], %196 {strides = array<i32>} : memref<2x64xf32, #tpu.memory_space<vmem>>, vector<2x32xf32>,
    %198 = vector.extract_strided_slice %196 {offsets = [0, 0], sizes = [1, 32], strides = [1, 1]} : vector<2x32xf32> to vector<1x32xf32>
    %c2 = arith.constant 2 : index
    %c0_63 = arith.constant 0 : index
    %199 = vector.load %arg12[%c2, %c0_63] : memref<16x32xf32, #tpu.memory_space<vmem>>, vector<1x32xf32>
    tpu.vector_store %arg12[%c2, %c0_63], %198 {strides = array<i32>} : memref<16x32xf32, #tpu.memory_space<vmem>>, vector<1x32xf32>,
    %200 = vector.extract_strided_slice %196 {offsets = [1, 0], sizes = [1, 32], strides = [1, 1]} : vector<2x32xf32> to vector<1x32xf32>
    %c10 = arith.constant 10 : index
    %c0_64 = arith.constant 0 : index
    %201 = vector.load %arg12[%c10, %c0_64] : memref<16x32xf32, #tpu.memory_space<vmem>>, vector<1x32xf32>
    tpu.vector_store %arg12[%c10, %c0_64], %200 {strides = array<i32>} : memref<16x32xf32, #tpu.memory_space<vmem>>, vector<1x32xf32>,
    %202 = vector.extract_strided_slice %5 {offsets = [6, 0], sizes = [2, 128], strides = [1, 1]} : vector<16x128xf32> to vector<2x128xf32>
    %cst_65 = arith.constant dense<0.000000e+00> : vector<2x128xf32>
    %203 = tpu.matmul %167, %6, %cst_65 {dimension_numbers = #tpu.dot_dimension_numbers<[1], [0], [0], [1], [0, 0, 1, 1], [], []>} : vector<2x32xf32>, vector<32x128xf32>, vector<2x128xf32> -> vector<2x128xf32>
    %204 = arith.addf %202, %203 : vector<2x128xf32>
    %205 = vector.extract_strided_slice %204 {offsets = [0, 0], sizes = [2, 32], strides = [1, 1]} : vector<2x128xf32> to vector<2x32xf32>
    %206 = arith.negf %205 : vector<2x32xf32>
    %207 = math.exp %206 : vector<2x32xf32>
    %cst_66 = arith.constant 1.000000e+00 : f32
    %208 = vector.broadcast %cst_66 : f32 to vector<2x32xf32>
    %209 = arith.addf %208, %207 : vector<2x32xf32>
    %210 = arith.divf %208, %209 : vector<2x32xf32>
    %211 = vector.extract_strided_slice %204 {offsets = [0, 32], sizes = [2, 32], strides = [1, 1]} : vector<2x128xf32> to vector<2x32xf32>
    %212 = arith.negf %211 : vector<2x32xf32>
    %213 = math.exp %212 : vector<2x32xf32>
    %cst_67 = arith.constant 1.000000e+00 : f32
    %214 = vector.broadcast %cst_67 : f32 to vector<2x32xf32>
    %215 = arith.addf %214, %213 : vector<2x32xf32>
    %216 = arith.divf %214, %215 : vector<2x32xf32>
    %217 = vector.extract_strided_slice %204 {offsets = [0, 64], sizes = [2, 32], strides = [1, 1]} : vector<2x128xf32> to vector<2x32xf32>
    %218 = math.tanh %217 : vector<2x32xf32>
    %219 = vector.extract_strided_slice %204 {offsets = [0, 96], sizes = [2, 32], strides = [1, 1]} : vector<2x128xf32> to vector<2x32xf32>
    %220 = arith.negf %219 : vector<2x32xf32>
    %221 = math.exp %220 : vector<2x32xf32>
    %cst_68 = arith.constant 1.000000e+00 : f32
    %222 = vector.broadcast %cst_68 : f32 to vector<2x32xf32>
    %223 = arith.addf %222, %221 : vector<2x32xf32>
    %224 = arith.divf %222, %223 : vector<2x32xf32>
    %225 = arith.mulf %216, %165 : vector<2x32xf32>
    %226 = arith.mulf %210, %218 : vector<2x32xf32>
    %227 = arith.addf %225, %226 : vector<2x32xf32>
    %228 = math.tanh %227 : vector<2x32xf32>
    %229 = arith.mulf %224, %228 : vector<2x32xf32>
    %c0_69 = arith.constant 0 : index
    %c0_70 = arith.constant 0 : index
    %230 = vector.load %arg11[%c0_69, %c0_70] : memref<2x64xf32, #tpu.memory_space<vmem>>, vector<2x32xf32>
    tpu.vector_store %arg11[%c0_69, %c0_70], %229 {strides = array<i32>} : memref<2x64xf32, #tpu.memory_space<vmem>>, vector<2x32xf32>,
    %c0_71 = arith.constant 0 : index
    %c0_72 = arith.constant 0 : index
    %231 = vector.load %arg11[%c0_71, %c0_72] : memref<2x64xf32, #tpu.memory_space<vmem>>, vector<2x64xf32>
    %cst_73 = arith.constant dense<0.000000e+00> : vector<2x128xf32>
    %232 = tpu.matmul %231, %7, %cst_73 {dimension_numbers = #tpu.dot_dimension_numbers<[1], [0], [0], [1], [0, 0, 1, 1], [], []>} : vector<2x64xf32>, vector<64x128xf32>, vector<2x128xf32> -> vector<2x128xf32>
    %233 = arith.addf %232, %10 : vector<2x128xf32>
    %234 = vector.extract_strided_slice %233 {offsets = [0, 0], sizes = [2, 32], strides = [1, 1]} : vector<2x128xf32> to vector<2x32xf32>
    %235 = arith.negf %234 : vector<2x32xf32>
    %236 = math.exp %235 : vector<2x32xf32>
    %cst_74 = arith.constant 1.000000e+00 : f32
    %237 = vector.broadcast %cst_74 : f32 to vector<2x32xf32>
    %238 = arith.addf %237, %236 : vector<2x32xf32>
    %239 = arith.divf %237, %238 : vector<2x32xf32>
    %240 = vector.extract_strided_slice %233 {offsets = [0, 32], sizes = [2, 32], strides = [1, 1]} : vector<2x128xf32> to vector<2x32xf32>
    %241 = arith.negf %240 : vector<2x32xf32>
    %242 = math.exp %241 : vector<2x32xf32>
    %cst_75 = arith.constant 1.000000e+00 : f32
    %243 = vector.broadcast %cst_75 : f32 to vector<2x32xf32>
    %244 = arith.addf %243, %242 : vector<2x32xf32>
    %245 = arith.divf %243, %244 : vector<2x32xf32>
    %246 = vector.extract_strided_slice %233 {offsets = [0, 64], sizes = [2, 32], strides = [1, 1]} : vector<2x128xf32> to vector<2x32xf32>
    %247 = math.tanh %246 : vector<2x32xf32>
    %248 = vector.extract_strided_slice %233 {offsets = [0, 96], sizes = [2, 32], strides = [1, 1]} : vector<2x128xf32> to vector<2x32xf32>
    %249 = arith.negf %248 : vector<2x32xf32>
    %250 = math.exp %249 : vector<2x32xf32>
    %cst_76 = arith.constant 1.000000e+00 : f32
    %251 = vector.broadcast %cst_76 : f32 to vector<2x32xf32>
    %252 = arith.addf %251, %250 : vector<2x32xf32>
    %253 = arith.divf %251, %252 : vector<2x32xf32>
    %254 = arith.mulf %245, %194 : vector<2x32xf32>
    %255 = arith.mulf %239, %247 : vector<2x32xf32>
    %256 = arith.addf %254, %255 : vector<2x32xf32>
    %257 = math.tanh %256 : vector<2x32xf32>
    %258 = arith.mulf %253, %257 : vector<2x32xf32>
    %c0_77 = arith.constant 0 : index
    %c32_78 = arith.constant 32 : index
    %259 = vector.load %arg11[%c0_77, %c32_78] : memref<2x64xf32, #tpu.memory_space<vmem>>, vector<2x32xf32>
    tpu.vector_store %arg11[%c0_77, %c32_78], %258 {strides = array<i32>} : memref<2x64xf32, #tpu.memory_space<vmem>>, vector<2x32xf32>,
    %260 = vector.extract_strided_slice %258 {offsets = [0, 0], sizes = [1, 32], strides = [1, 1]} : vector<2x32xf32> to vector<1x32xf32>
    %c3 = arith.constant 3 : index
    %c0_79 = arith.constant 0 : index
    %261 = vector.load %arg12[%c3, %c0_79] : memref<16x32xf32, #tpu.memory_space<vmem>>, vector<1x32xf32>
    tpu.vector_store %arg12[%c3, %c0_79], %260 {strides = array<i32>} : memref<16x32xf32, #tpu.memory_space<vmem>>, vector<1x32xf32>,
    %262 = vector.extract_strided_slice %258 {offsets = [1, 0], sizes = [1, 32], strides = [1, 1]} : vector<2x32xf32> to vector<1x32xf32>
    %c11 = arith.constant 11 : index
    %c0_80 = arith.constant 0 : index
    %263 = vector.load %arg12[%c11, %c0_80] : memref<16x32xf32, #tpu.memory_space<vmem>>, vector<1x32xf32>
    tpu.vector_store %arg12[%c11, %c0_80], %262 {strides = array<i32>} : memref<16x32xf32, #tpu.memory_space<vmem>>, vector<1x32xf32>,
    %264 = vector.extract_strided_slice %5 {offsets = [8, 0], sizes = [2, 128], strides = [1, 1]} : vector<16x128xf32> to vector<2x128xf32>
    %cst_81 = arith.constant dense<0.000000e+00> : vector<2x128xf32>
    %265 = tpu.matmul %229, %6, %cst_81 {dimension_numbers = #tpu.dot_dimension_numbers<[1], [0], [0], [1], [0, 0, 1, 1], [], []>} : vector<2x32xf32>, vector<32x128xf32>, vector<2x128xf32> -> vector<2x128xf32>
    %266 = arith.addf %264, %265 : vector<2x128xf32>
    %267 = vector.extract_strided_slice %266 {offsets = [0, 0], sizes = [2, 32], strides = [1, 1]} : vector<2x128xf32> to vector<2x32xf32>
    %268 = arith.negf %267 : vector<2x32xf32>
    %269 = math.exp %268 : vector<2x32xf32>
    %cst_82 = arith.constant 1.000000e+00 : f32
    %270 = vector.broadcast %cst_82 : f32 to vector<2x32xf32>
    %271 = arith.addf %270, %269 : vector<2x32xf32>
    %272 = arith.divf %270, %271 : vector<2x32xf32>
    %273 = vector.extract_strided_slice %266 {offsets = [0, 32], sizes = [2, 32], strides = [1, 1]} : vector<2x128xf32> to vector<2x32xf32>
    %274 = arith.negf %273 : vector<2x32xf32>
    %275 = math.exp %274 : vector<2x32xf32>
    %cst_83 = arith.constant 1.000000e+00 : f32
    %276 = vector.broadcast %cst_83 : f32 to vector<2x32xf32>
    %277 = arith.addf %276, %275 : vector<2x32xf32>
    %278 = arith.divf %276, %277 : vector<2x32xf32>
    %279 = vector.extract_strided_slice %266 {offsets = [0, 64], sizes = [2, 32], strides = [1, 1]} : vector<2x128xf32> to vector<2x32xf32>
    %280 = math.tanh %279 : vector<2x32xf32>
    %281 = vector.extract_strided_slice %266 {offsets = [0, 96], sizes = [2, 32], strides = [1, 1]} : vector<2x128xf32> to vector<2x32xf32>
    %282 = arith.negf %281 : vector<2x32xf32>
    %283 = math.exp %282 : vector<2x32xf32>
    %cst_84 = arith.constant 1.000000e+00 : f32
    %284 = vector.broadcast %cst_84 : f32 to vector<2x32xf32>
    %285 = arith.addf %284, %283 : vector<2x32xf32>
    %286 = arith.divf %284, %285 : vector<2x32xf32>
    %287 = arith.mulf %278, %227 : vector<2x32xf32>
    %288 = arith.mulf %272, %280 : vector<2x32xf32>
    %289 = arith.addf %287, %288 : vector<2x32xf32>
    %290 = math.tanh %289 : vector<2x32xf32>
    %291 = arith.mulf %286, %290 : vector<2x32xf32>
    %c0_85 = arith.constant 0 : index
    %c0_86 = arith.constant 0 : index
    %292 = vector.load %arg11[%c0_85, %c0_86] : memref<2x64xf32, #tpu.memory_space<vmem>>, vector<2x32xf32>
    tpu.vector_store %arg11[%c0_85, %c0_86], %291 {strides = array<i32>} : memref<2x64xf32, #tpu.memory_space<vmem>>, vector<2x32xf32>,
    %c0_87 = arith.constant 0 : index
    %c0_88 = arith.constant 0 : index
    %293 = vector.load %arg11[%c0_87, %c0_88] : memref<2x64xf32, #tpu.memory_space<vmem>>, vector<2x64xf32>
    %cst_89 = arith.constant dense<0.000000e+00> : vector<2x128xf32>
    %294 = tpu.matmul %293, %7, %cst_89 {dimension_numbers = #tpu.dot_dimension_numbers<[1], [0], [0], [1], [0, 0, 1, 1], [], []>} : vector<2x64xf32>, vector<64x128xf32>, vector<2x128xf32> -> vector<2x128xf32>
    %295 = arith.addf %294, %10 : vector<2x128xf32>
    %296 = vector.extract_strided_slice %295 {offsets = [0, 0], sizes = [2, 32], strides = [1, 1]} : vector<2x128xf32> to vector<2x32xf32>
    %297 = arith.negf %296 : vector<2x32xf32>
    %298 = math.exp %297 : vector<2x32xf32>
    %cst_90 = arith.constant 1.000000e+00 : f32
    %299 = vector.broadcast %cst_90 : f32 to vector<2x32xf32>
    %300 = arith.addf %299, %298 : vector<2x32xf32>
    %301 = arith.divf %299, %300 : vector<2x32xf32>
    %302 = vector.extract_strided_slice %295 {offsets = [0, 32], sizes = [2, 32], strides = [1, 1]} : vector<2x128xf32> to vector<2x32xf32>
    %303 = arith.negf %302 : vector<2x32xf32>
    %304 = math.exp %303 : vector<2x32xf32>
    %cst_91 = arith.constant 1.000000e+00 : f32
    %305 = vector.broadcast %cst_91 : f32 to vector<2x32xf32>
    %306 = arith.addf %305, %304 : vector<2x32xf32>
    %307 = arith.divf %305, %306 : vector<2x32xf32>
    %308 = vector.extract_strided_slice %295 {offsets = [0, 64], sizes = [2, 32], strides = [1, 1]} : vector<2x128xf32> to vector<2x32xf32>
    %309 = math.tanh %308 : vector<2x32xf32>
    %310 = vector.extract_strided_slice %295 {offsets = [0, 96], sizes = [2, 32], strides = [1, 1]} : vector<2x128xf32> to vector<2x32xf32>
    %311 = arith.negf %310 : vector<2x32xf32>
    %312 = math.exp %311 : vector<2x32xf32>
    %cst_92 = arith.constant 1.000000e+00 : f32
    %313 = vector.broadcast %cst_92 : f32 to vector<2x32xf32>
    %314 = arith.addf %313, %312 : vector<2x32xf32>
    %315 = arith.divf %313, %314 : vector<2x32xf32>
    %316 = arith.mulf %307, %256 : vector<2x32xf32>
    %317 = arith.mulf %301, %309 : vector<2x32xf32>
    %318 = arith.addf %316, %317 : vector<2x32xf32>
    %319 = math.tanh %318 : vector<2x32xf32>
    %320 = arith.mulf %315, %319 : vector<2x32xf32>
    %c0_93 = arith.constant 0 : index
    %c32_94 = arith.constant 32 : index
    %321 = vector.load %arg11[%c0_93, %c32_94] : memref<2x64xf32, #tpu.memory_space<vmem>>, vector<2x32xf32>
    tpu.vector_store %arg11[%c0_93, %c32_94], %320 {strides = array<i32>} : memref<2x64xf32, #tpu.memory_space<vmem>>, vector<2x32xf32>,
    %322 = vector.extract_strided_slice %320 {offsets = [0, 0], sizes = [1, 32], strides = [1, 1]} : vector<2x32xf32> to vector<1x32xf32>
    %c4 = arith.constant 4 : index
    %c0_95 = arith.constant 0 : index
    %323 = vector.load %arg12[%c4, %c0_95] : memref<16x32xf32, #tpu.memory_space<vmem>>, vector<1x32xf32>
    tpu.vector_store %arg12[%c4, %c0_95], %322 {strides = array<i32>} : memref<16x32xf32, #tpu.memory_space<vmem>>, vector<1x32xf32>,
    %324 = vector.extract_strided_slice %320 {offsets = [1, 0], sizes = [1, 32], strides = [1, 1]} : vector<2x32xf32> to vector<1x32xf32>
    %c12 = arith.constant 12 : index
    %c0_96 = arith.constant 0 : index
    %325 = vector.load %arg12[%c12, %c0_96] : memref<16x32xf32, #tpu.memory_space<vmem>>, vector<1x32xf32>
    tpu.vector_store %arg12[%c12, %c0_96], %324 {strides = array<i32>} : memref<16x32xf32, #tpu.memory_space<vmem>>, vector<1x32xf32>,
    %326 = vector.extract_strided_slice %5 {offsets = [10, 0], sizes = [2, 128], strides = [1, 1]} : vector<16x128xf32> to vector<2x128xf32>
    %cst_97 = arith.constant dense<0.000000e+00> : vector<2x128xf32>
    %327 = tpu.matmul %291, %6, %cst_97 {dimension_numbers = #tpu.dot_dimension_numbers<[1], [0], [0], [1], [0, 0, 1, 1], [], []>} : vector<2x32xf32>, vector<32x128xf32>, vector<2x128xf32> -> vector<2x128xf32>
    %328 = arith.addf %326, %327 : vector<2x128xf32>
    %329 = vector.extract_strided_slice %328 {offsets = [0, 0], sizes = [2, 32], strides = [1, 1]} : vector<2x128xf32> to vector<2x32xf32>
    %330 = arith.negf %329 : vector<2x32xf32>
    %331 = math.exp %330 : vector<2x32xf32>
    %cst_98 = arith.constant 1.000000e+00 : f32
    %332 = vector.broadcast %cst_98 : f32 to vector<2x32xf32>
    %333 = arith.addf %332, %331 : vector<2x32xf32>
    %334 = arith.divf %332, %333 : vector<2x32xf32>
    %335 = vector.extract_strided_slice %328 {offsets = [0, 32], sizes = [2, 32], strides = [1, 1]} : vector<2x128xf32> to vector<2x32xf32>
    %336 = arith.negf %335 : vector<2x32xf32>
    %337 = math.exp %336 : vector<2x32xf32>
    %cst_99 = arith.constant 1.000000e+00 : f32
    %338 = vector.broadcast %cst_99 : f32 to vector<2x32xf32>
    %339 = arith.addf %338, %337 : vector<2x32xf32>
    %340 = arith.divf %338, %339 : vector<2x32xf32>
    %341 = vector.extract_strided_slice %328 {offsets = [0, 64], sizes = [2, 32], strides = [1, 1]} : vector<2x128xf32> to vector<2x32xf32>
    %342 = math.tanh %341 : vector<2x32xf32>
    %343 = vector.extract_strided_slice %328 {offsets = [0, 96], sizes = [2, 32], strides = [1, 1]} : vector<2x128xf32> to vector<2x32xf32>
    %344 = arith.negf %343 : vector<2x32xf32>
    %345 = math.exp %344 : vector<2x32xf32>
    %cst_100 = arith.constant 1.000000e+00 : f32
    %346 = vector.broadcast %cst_100 : f32 to vector<2x32xf32>
    %347 = arith.addf %346, %345 : vector<2x32xf32>
    %348 = arith.divf %346, %347 : vector<2x32xf32>
    %349 = arith.mulf %340, %289 : vector<2x32xf32>
    %350 = arith.mulf %334, %342 : vector<2x32xf32>
    %351 = arith.addf %349, %350 : vector<2x32xf32>
    %352 = math.tanh %351 : vector<2x32xf32>
    %353 = arith.mulf %348, %352 : vector<2x32xf32>
    %c0_101 = arith.constant 0 : index
    %c0_102 = arith.constant 0 : index
    %354 = vector.load %arg11[%c0_101, %c0_102] : memref<2x64xf32, #tpu.memory_space<vmem>>, vector<2x32xf32>
    tpu.vector_store %arg11[%c0_101, %c0_102], %353 {strides = array<i32>} : memref<2x64xf32, #tpu.memory_space<vmem>>, vector<2x32xf32>,
    %c0_103 = arith.constant 0 : index
    %c0_104 = arith.constant 0 : index
    %355 = vector.load %arg11[%c0_103, %c0_104] : memref<2x64xf32, #tpu.memory_space<vmem>>, vector<2x64xf32>
    %cst_105 = arith.constant dense<0.000000e+00> : vector<2x128xf32>
    %356 = tpu.matmul %355, %7, %cst_105 {dimension_numbers = #tpu.dot_dimension_numbers<[1], [0], [0], [1], [0, 0, 1, 1], [], []>} : vector<2x64xf32>, vector<64x128xf32>, vector<2x128xf32> -> vector<2x128xf32>
    %357 = arith.addf %356, %10 : vector<2x128xf32>
    %358 = vector.extract_strided_slice %357 {offsets = [0, 0], sizes = [2, 32], strides = [1, 1]} : vector<2x128xf32> to vector<2x32xf32>
    %359 = arith.negf %358 : vector<2x32xf32>
    %360 = math.exp %359 : vector<2x32xf32>
    %cst_106 = arith.constant 1.000000e+00 : f32
    %361 = vector.broadcast %cst_106 : f32 to vector<2x32xf32>
    %362 = arith.addf %361, %360 : vector<2x32xf32>
    %363 = arith.divf %361, %362 : vector<2x32xf32>
    %364 = vector.extract_strided_slice %357 {offsets = [0, 32], sizes = [2, 32], strides = [1, 1]} : vector<2x128xf32> to vector<2x32xf32>
    %365 = arith.negf %364 : vector<2x32xf32>
    %366 = math.exp %365 : vector<2x32xf32>
    %cst_107 = arith.constant 1.000000e+00 : f32
    %367 = vector.broadcast %cst_107 : f32 to vector<2x32xf32>
    %368 = arith.addf %367, %366 : vector<2x32xf32>
    %369 = arith.divf %367, %368 : vector<2x32xf32>
    %370 = vector.extract_strided_slice %357 {offsets = [0, 64], sizes = [2, 32], strides = [1, 1]} : vector<2x128xf32> to vector<2x32xf32>
    %371 = math.tanh %370 : vector<2x32xf32>
    %372 = vector.extract_strided_slice %357 {offsets = [0, 96], sizes = [2, 32], strides = [1, 1]} : vector<2x128xf32> to vector<2x32xf32>
    %373 = arith.negf %372 : vector<2x32xf32>
    %374 = math.exp %373 : vector<2x32xf32>
    %cst_108 = arith.constant 1.000000e+00 : f32
    %375 = vector.broadcast %cst_108 : f32 to vector<2x32xf32>
    %376 = arith.addf %375, %374 : vector<2x32xf32>
    %377 = arith.divf %375, %376 : vector<2x32xf32>
    %378 = arith.mulf %369, %318 : vector<2x32xf32>
    %379 = arith.mulf %363, %371 : vector<2x32xf32>
    %380 = arith.addf %378, %379 : vector<2x32xf32>
    %381 = math.tanh %380 : vector<2x32xf32>
    %382 = arith.mulf %377, %381 : vector<2x32xf32>
    %c0_109 = arith.constant 0 : index
    %c32_110 = arith.constant 32 : index
    %383 = vector.load %arg11[%c0_109, %c32_110] : memref<2x64xf32, #tpu.memory_space<vmem>>, vector<2x32xf32>
    tpu.vector_store %arg11[%c0_109, %c32_110], %382 {strides = array<i32>} : memref<2x64xf32, #tpu.memory_space<vmem>>, vector<2x32xf32>,
    %384 = vector.extract_strided_slice %382 {offsets = [0, 0], sizes = [1, 32], strides = [1, 1]} : vector<2x32xf32> to vector<1x32xf32>
    %c5 = arith.constant 5 : index
    %c0_111 = arith.constant 0 : index
    %385 = vector.load %arg12[%c5, %c0_111] : memref<16x32xf32, #tpu.memory_space<vmem>>, vector<1x32xf32>
    tpu.vector_store %arg12[%c5, %c0_111], %384 {strides = array<i32>} : memref<16x32xf32, #tpu.memory_space<vmem>>, vector<1x32xf32>,
    %386 = vector.extract_strided_slice %382 {offsets = [1, 0], sizes = [1, 32], strides = [1, 1]} : vector<2x32xf32> to vector<1x32xf32>
    %c13 = arith.constant 13 : index
    %c0_112 = arith.constant 0 : index
    %387 = vector.load %arg12[%c13, %c0_112] : memref<16x32xf32, #tpu.memory_space<vmem>>, vector<1x32xf32>
    tpu.vector_store %arg12[%c13, %c0_112], %386 {strides = array<i32>} : memref<16x32xf32, #tpu.memory_space<vmem>>, vector<1x32xf32>,
    %388 = vector.extract_strided_slice %5 {offsets = [12, 0], sizes = [2, 128], strides = [1, 1]} : vector<16x128xf32> to vector<2x128xf32>
    %cst_113 = arith.constant dense<0.000000e+00> : vector<2x128xf32>
    %389 = tpu.matmul %353, %6, %cst_113 {dimension_numbers = #tpu.dot_dimension_numbers<[1], [0], [0], [1], [0, 0, 1, 1], [], []>} : vector<2x32xf32>, vector<32x128xf32>, vector<2x128xf32> -> vector<2x128xf32>
    %390 = arith.addf %388, %389 : vector<2x128xf32>
    %391 = vector.extract_strided_slice %390 {offsets = [0, 0], sizes = [2, 32], strides = [1, 1]} : vector<2x128xf32> to vector<2x32xf32>
    %392 = arith.negf %391 : vector<2x32xf32>
    %393 = math.exp %392 : vector<2x32xf32>
    %cst_114 = arith.constant 1.000000e+00 : f32
    %394 = vector.broadcast %cst_114 : f32 to vector<2x32xf32>
    %395 = arith.addf %394, %393 : vector<2x32xf32>
    %396 = arith.divf %394, %395 : vector<2x32xf32>
    %397 = vector.extract_strided_slice %390 {offsets = [0, 32], sizes = [2, 32], strides = [1, 1]} : vector<2x128xf32> to vector<2x32xf32>
    %398 = arith.negf %397 : vector<2x32xf32>
    %399 = math.exp %398 : vector<2x32xf32>
    %cst_115 = arith.constant 1.000000e+00 : f32
    %400 = vector.broadcast %cst_115 : f32 to vector<2x32xf32>
    %401 = arith.addf %400, %399 : vector<2x32xf32>
    %402 = arith.divf %400, %401 : vector<2x32xf32>
    %403 = vector.extract_strided_slice %390 {offsets = [0, 64], sizes = [2, 32], strides = [1, 1]} : vector<2x128xf32> to vector<2x32xf32>
    %404 = math.tanh %403 : vector<2x32xf32>
    %405 = vector.extract_strided_slice %390 {offsets = [0, 96], sizes = [2, 32], strides = [1, 1]} : vector<2x128xf32> to vector<2x32xf32>
    %406 = arith.negf %405 : vector<2x32xf32>
    %407 = math.exp %406 : vector<2x32xf32>
    %cst_116 = arith.constant 1.000000e+00 : f32
    %408 = vector.broadcast %cst_116 : f32 to vector<2x32xf32>
    %409 = arith.addf %408, %407 : vector<2x32xf32>
    %410 = arith.divf %408, %409 : vector<2x32xf32>
    %411 = arith.mulf %402, %351 : vector<2x32xf32>
    %412 = arith.mulf %396, %404 : vector<2x32xf32>
    %413 = arith.addf %411, %412 : vector<2x32xf32>
    %414 = math.tanh %413 : vector<2x32xf32>
    %415 = arith.mulf %410, %414 : vector<2x32xf32>
    %c0_117 = arith.constant 0 : index
    %c0_118 = arith.constant 0 : index
    %416 = vector.load %arg11[%c0_117, %c0_118] : memref<2x64xf32, #tpu.memory_space<vmem>>, vector<2x32xf32>
    tpu.vector_store %arg11[%c0_117, %c0_118], %415 {strides = array<i32>} : memref<2x64xf32, #tpu.memory_space<vmem>>, vector<2x32xf32>,
    %c0_119 = arith.constant 0 : index
    %c0_120 = arith.constant 0 : index
    %417 = vector.load %arg11[%c0_119, %c0_120] : memref<2x64xf32, #tpu.memory_space<vmem>>, vector<2x64xf32>
    %cst_121 = arith.constant dense<0.000000e+00> : vector<2x128xf32>
    %418 = tpu.matmul %417, %7, %cst_121 {dimension_numbers = #tpu.dot_dimension_numbers<[1], [0], [0], [1], [0, 0, 1, 1], [], []>} : vector<2x64xf32>, vector<64x128xf32>, vector<2x128xf32> -> vector<2x128xf32>
    %419 = arith.addf %418, %10 : vector<2x128xf32>
    %420 = vector.extract_strided_slice %419 {offsets = [0, 0], sizes = [2, 32], strides = [1, 1]} : vector<2x128xf32> to vector<2x32xf32>
    %421 = arith.negf %420 : vector<2x32xf32>
    %422 = math.exp %421 : vector<2x32xf32>
    %cst_122 = arith.constant 1.000000e+00 : f32
    %423 = vector.broadcast %cst_122 : f32 to vector<2x32xf32>
    %424 = arith.addf %423, %422 : vector<2x32xf32>
    %425 = arith.divf %423, %424 : vector<2x32xf32>
    %426 = vector.extract_strided_slice %419 {offsets = [0, 32], sizes = [2, 32], strides = [1, 1]} : vector<2x128xf32> to vector<2x32xf32>
    %427 = arith.negf %426 : vector<2x32xf32>
    %428 = math.exp %427 : vector<2x32xf32>
    %cst_123 = arith.constant 1.000000e+00 : f32
    %429 = vector.broadcast %cst_123 : f32 to vector<2x32xf32>
    %430 = arith.addf %429, %428 : vector<2x32xf32>
    %431 = arith.divf %429, %430 : vector<2x32xf32>
    %432 = vector.extract_strided_slice %419 {offsets = [0, 64], sizes = [2, 32], strides = [1, 1]} : vector<2x128xf32> to vector<2x32xf32>
    %433 = math.tanh %432 : vector<2x32xf32>
    %434 = vector.extract_strided_slice %419 {offsets = [0, 96], sizes = [2, 32], strides = [1, 1]} : vector<2x128xf32> to vector<2x32xf32>
    %435 = arith.negf %434 : vector<2x32xf32>
    %436 = math.exp %435 : vector<2x32xf32>
    %cst_124 = arith.constant 1.000000e+00 : f32
    %437 = vector.broadcast %cst_124 : f32 to vector<2x32xf32>
    %438 = arith.addf %437, %436 : vector<2x32xf32>
    %439 = arith.divf %437, %438 : vector<2x32xf32>
    %440 = arith.mulf %431, %380 : vector<2x32xf32>
    %441 = arith.mulf %425, %433 : vector<2x32xf32>
    %442 = arith.addf %440, %441 : vector<2x32xf32>
    %443 = math.tanh %442 : vector<2x32xf32>
    %444 = arith.mulf %439, %443 : vector<2x32xf32>
    %c0_125 = arith.constant 0 : index
    %c32_126 = arith.constant 32 : index
    %445 = vector.load %arg11[%c0_125, %c32_126] : memref<2x64xf32, #tpu.memory_space<vmem>>, vector<2x32xf32>
    tpu.vector_store %arg11[%c0_125, %c32_126], %444 {strides = array<i32>} : memref<2x64xf32, #tpu.memory_space<vmem>>, vector<2x32xf32>,
    %446 = vector.extract_strided_slice %444 {offsets = [0, 0], sizes = [1, 32], strides = [1, 1]} : vector<2x32xf32> to vector<1x32xf32>
    %c6 = arith.constant 6 : index
    %c0_127 = arith.constant 0 : index
    %447 = vector.load %arg12[%c6, %c0_127] : memref<16x32xf32, #tpu.memory_space<vmem>>, vector<1x32xf32>
    tpu.vector_store %arg12[%c6, %c0_127], %446 {strides = array<i32>} : memref<16x32xf32, #tpu.memory_space<vmem>>, vector<1x32xf32>,
    %448 = vector.extract_strided_slice %444 {offsets = [1, 0], sizes = [1, 32], strides = [1, 1]} : vector<2x32xf32> to vector<1x32xf32>
    %c14 = arith.constant 14 : index
    %c0_128 = arith.constant 0 : index
    %449 = vector.load %arg12[%c14, %c0_128] : memref<16x32xf32, #tpu.memory_space<vmem>>, vector<1x32xf32>
    tpu.vector_store %arg12[%c14, %c0_128], %448 {strides = array<i32>} : memref<16x32xf32, #tpu.memory_space<vmem>>, vector<1x32xf32>,
    %450 = vector.extract_strided_slice %5 {offsets = [14, 0], sizes = [2, 128], strides = [1, 1]} : vector<16x128xf32> to vector<2x128xf32>
    %cst_129 = arith.constant dense<0.000000e+00> : vector<2x128xf32>
    %451 = tpu.matmul %415, %6, %cst_129 {dimension_numbers = #tpu.dot_dimension_numbers<[1], [0], [0], [1], [0, 0, 1, 1], [], []>} : vector<2x32xf32>, vector<32x128xf32>, vector<2x128xf32> -> vector<2x128xf32>
    %452 = arith.addf %450, %451 : vector<2x128xf32>
    %453 = vector.extract_strided_slice %452 {offsets = [0, 0], sizes = [2, 32], strides = [1, 1]} : vector<2x128xf32> to vector<2x32xf32>
    %454 = arith.negf %453 : vector<2x32xf32>
    %455 = math.exp %454 : vector<2x32xf32>
    %cst_130 = arith.constant 1.000000e+00 : f32
    %456 = vector.broadcast %cst_130 : f32 to vector<2x32xf32>
    %457 = arith.addf %456, %455 : vector<2x32xf32>
    %458 = arith.divf %456, %457 : vector<2x32xf32>
    %459 = vector.extract_strided_slice %452 {offsets = [0, 32], sizes = [2, 32], strides = [1, 1]} : vector<2x128xf32> to vector<2x32xf32>
    %460 = arith.negf %459 : vector<2x32xf32>
    %461 = math.exp %460 : vector<2x32xf32>
    %cst_131 = arith.constant 1.000000e+00 : f32
    %462 = vector.broadcast %cst_131 : f32 to vector<2x32xf32>
    %463 = arith.addf %462, %461 : vector<2x32xf32>
    %464 = arith.divf %462, %463 : vector<2x32xf32>
    %465 = vector.extract_strided_slice %452 {offsets = [0, 64], sizes = [2, 32], strides = [1, 1]} : vector<2x128xf32> to vector<2x32xf32>
    %466 = math.tanh %465 : vector<2x32xf32>
    %467 = vector.extract_strided_slice %452 {offsets = [0, 96], sizes = [2, 32], strides = [1, 1]} : vector<2x128xf32> to vector<2x32xf32>
    %468 = arith.negf %467 : vector<2x32xf32>
    %469 = math.exp %468 : vector<2x32xf32>
    %cst_132 = arith.constant 1.000000e+00 : f32
    %470 = vector.broadcast %cst_132 : f32 to vector<2x32xf32>
    %471 = arith.addf %470, %469 : vector<2x32xf32>
    %472 = arith.divf %470, %471 : vector<2x32xf32>
    %473 = arith.mulf %464, %413 : vector<2x32xf32>
    %474 = arith.mulf %458, %466 : vector<2x32xf32>
    %475 = arith.addf %473, %474 : vector<2x32xf32>
    %476 = math.tanh %475 : vector<2x32xf32>
    %477 = arith.mulf %472, %476 : vector<2x32xf32>
    %c0_133 = arith.constant 0 : index
    %c0_134 = arith.constant 0 : index
    %478 = vector.load %arg11[%c0_133, %c0_134] : memref<2x64xf32, #tpu.memory_space<vmem>>, vector<2x32xf32>
    tpu.vector_store %arg11[%c0_133, %c0_134], %477 {strides = array<i32>} : memref<2x64xf32, #tpu.memory_space<vmem>>, vector<2x32xf32>,
    %c0_135 = arith.constant 0 : index
    %c0_136 = arith.constant 0 : index
    %479 = vector.load %arg11[%c0_135, %c0_136] : memref<2x64xf32, #tpu.memory_space<vmem>>, vector<2x64xf32>
    %cst_137 = arith.constant dense<0.000000e+00> : vector<2x128xf32>
    %480 = tpu.matmul %479, %7, %cst_137 {dimension_numbers = #tpu.dot_dimension_numbers<[1], [0], [0], [1], [0, 0, 1, 1], [], []>} : vector<2x64xf32>, vector<64x128xf32>, vector<2x128xf32> -> vector<2x128xf32>
    %481 = arith.addf %480, %10 : vector<2x128xf32>
    %482 = vector.extract_strided_slice %481 {offsets = [0, 0], sizes = [2, 32], strides = [1, 1]} : vector<2x128xf32> to vector<2x32xf32>
    %483 = arith.negf %482 : vector<2x32xf32>
    %484 = math.exp %483 : vector<2x32xf32>
    %cst_138 = arith.constant 1.000000e+00 : f32
    %485 = vector.broadcast %cst_138 : f32 to vector<2x32xf32>
    %486 = arith.addf %485, %484 : vector<2x32xf32>
    %487 = arith.divf %485, %486 : vector<2x32xf32>
    %488 = vector.extract_strided_slice %481 {offsets = [0, 32], sizes = [2, 32], strides = [1, 1]} : vector<2x128xf32> to vector<2x32xf32>
    %489 = arith.negf %488 : vector<2x32xf32>
    %490 = math.exp %489 : vector<2x32xf32>
    %cst_139 = arith.constant 1.000000e+00 : f32
    %491 = vector.broadcast %cst_139 : f32 to vector<2x32xf32>
    %492 = arith.addf %491, %490 : vector<2x32xf32>
    %493 = arith.divf %491, %492 : vector<2x32xf32>
    %494 = vector.extract_strided_slice %481 {offsets = [0, 64], sizes = [2, 32], strides = [1, 1]} : vector<2x128xf32> to vector<2x32xf32>
    %495 = math.tanh %494 : vector<2x32xf32>
    %496 = vector.extract_strided_slice %481 {offsets = [0, 96], sizes = [2, 32], strides = [1, 1]} : vector<2x128xf32> to vector<2x32xf32>
    %497 = arith.negf %496 : vector<2x32xf32>
    %498 = math.exp %497 : vector<2x32xf32>
    %cst_140 = arith.constant 1.000000e+00 : f32
    %499 = vector.broadcast %cst_140 : f32 to vector<2x32xf32>
    %500 = arith.addf %499, %498 : vector<2x32xf32>
    %501 = arith.divf %499, %500 : vector<2x32xf32>
    %502 = arith.mulf %493, %442 : vector<2x32xf32>
    %503 = arith.mulf %487, %495 : vector<2x32xf32>
    %504 = arith.addf %502, %503 : vector<2x32xf32>
    %505 = math.tanh %504 : vector<2x32xf32>
    %506 = arith.mulf %501, %505 : vector<2x32xf32>
    %c0_141 = arith.constant 0 : index
    %c32_142 = arith.constant 32 : index
    %507 = vector.load %arg11[%c0_141, %c32_142] : memref<2x64xf32, #tpu.memory_space<vmem>>, vector<2x32xf32>
    tpu.vector_store %arg11[%c0_141, %c32_142], %506 {strides = array<i32>} : memref<2x64xf32, #tpu.memory_space<vmem>>, vector<2x32xf32>,
    %508 = vector.extract_strided_slice %506 {offsets = [0, 0], sizes = [1, 32], strides = [1, 1]} : vector<2x32xf32> to vector<1x32xf32>
    %c7 = arith.constant 7 : index
    %c0_143 = arith.constant 0 : index
    %509 = vector.load %arg12[%c7, %c0_143] : memref<16x32xf32, #tpu.memory_space<vmem>>, vector<1x32xf32>
    tpu.vector_store %arg12[%c7, %c0_143], %508 {strides = array<i32>} : memref<16x32xf32, #tpu.memory_space<vmem>>, vector<1x32xf32>,
    %510 = vector.extract_strided_slice %506 {offsets = [1, 0], sizes = [1, 32], strides = [1, 1]} : vector<2x32xf32> to vector<1x32xf32>
    %c15 = arith.constant 15 : index
    %c0_144 = arith.constant 0 : index
    %511 = vector.load %arg12[%c15, %c0_144] : memref<16x32xf32, #tpu.memory_space<vmem>>, vector<1x32xf32>
    tpu.vector_store %arg12[%c15, %c0_144], %510 {strides = array<i32>} : memref<16x32xf32, #tpu.memory_space<vmem>>, vector<1x32xf32>,
    %c0_145 = arith.constant 0 : index
    %c0_146 = arith.constant 0 : index
    %c0_147 = arith.constant 0 : index
    %512 = vector.load %arg9[%c0_145, %c0_146, %c0_147] : memref<2x2x32xf32, #tpu.memory_space<vmem>>, vector<1x2x32xf32>
    %513 = vector.shape_cast %512 : vector<1x2x32xf32> to vector<2x32xf32>
    %514 = vector.shape_cast %477 : vector<2x32xf32> to vector<1x2x32xf32>
    tpu.vector_store %arg9[%c0_145, %c0_146, %c0_147], %514 {strides = array<i32>} : memref<2x2x32xf32, #tpu.memory_space<vmem>>, vector<1x2x32xf32>,
    %c1_148 = arith.constant 1 : index
    %c0_149 = arith.constant 0 : index
    %c0_150 = arith.constant 0 : index
    %515 = vector.load %arg9[%c1_148, %c0_149, %c0_150] : memref<2x2x32xf32, #tpu.memory_space<vmem>>, vector<1x2x32xf32>
    %516 = vector.shape_cast %515 : vector<1x2x32xf32> to vector<2x32xf32>
    %517 = vector.shape_cast %506 : vector<2x32xf32> to vector<1x2x32xf32>
    tpu.vector_store %arg9[%c1_148, %c0_149, %c0_150], %517 {strides = array<i32>} : memref<2x2x32xf32, #tpu.memory_space<vmem>>, vector<1x2x32xf32>,
    %c0_151 = arith.constant 0 : index
    %c0_152 = arith.constant 0 : index
    %c0_153 = arith.constant 0 : index
    %518 = vector.load %arg10[%c0_151, %c0_152, %c0_153] : memref<2x2x32xf32, #tpu.memory_space<vmem>>, vector<1x2x32xf32>
    %519 = vector.shape_cast %518 : vector<1x2x32xf32> to vector<2x32xf32>
    %520 = vector.shape_cast %475 : vector<2x32xf32> to vector<1x2x32xf32>
    tpu.vector_store %arg10[%c0_151, %c0_152, %c0_153], %520 {strides = array<i32>} : memref<2x2x32xf32, #tpu.memory_space<vmem>>, vector<1x2x32xf32>,
    %c1_154 = arith.constant 1 : index
    %c0_155 = arith.constant 0 : index
    %c0_156 = arith.constant 0 : index
    %521 = vector.load %arg10[%c1_154, %c0_155, %c0_156] : memref<2x2x32xf32, #tpu.memory_space<vmem>>, vector<1x2x32xf32>
    %522 = vector.shape_cast %521 : vector<1x2x32xf32> to vector<2x32xf32>
    %523 = vector.shape_cast %504 : vector<2x32xf32> to vector<1x2x32xf32>
    tpu.vector_store %arg10[%c1_154, %c0_155, %c0_156], %523 {strides = array<i32>} : memref<2x2x32xf32, #tpu.memory_space<vmem>>, vector<1x2x32xf32>,
    %c0_157 = arith.constant 0 : index
    %c0_158 = arith.constant 0 : index
    %524 = vector.load %arg12[%c0_157, %c0_158] : memref<16x32xf32, #tpu.memory_space<vmem>>, vector<16x32xf32>
    %c0_159 = arith.constant 0 : index
    %c0_160 = arith.constant 0 : index
    %525 = vector.load %arg6[%c0_159, %c0_160] : memref<32x64xf32, #tpu.memory_space<vmem>>, vector<32x64xf32>
    %cst_161 = arith.constant dense<0.000000e+00> : vector<16x64xf32>
    %526 = tpu.matmul %524, %525, %cst_161 {dimension_numbers = #tpu.dot_dimension_numbers<[1], [0], [0], [1], [0, 0, 1, 1], [], []>} : vector<16x32xf32>, vector<32x64xf32>, vector<16x64xf32> -> vector<16x64xf32>
    %c0_162 = arith.constant 0 : index
    %c0_163 = arith.constant 0 : index
    %527 = vector.load %arg7[%c0_162, %c0_163] : memref<1x64xf32, #tpu.memory_space<vmem>>, vector<1x64xf32>
    %528 = vector.broadcast %527 : vector<1x64xf32> to vector<16x64xf32>
    %529 = arith.addf %526, %528 : vector<16x64xf32>
    %c0_164 = arith.constant 0 : index
    %c0_165 = arith.constant 0 : index
    %530 = vector.load %arg8[%c0_164, %c0_165] : memref<16x64xf32, #tpu.memory_space<vmem>>, vector<16x64xf32>
    tpu.vector_store %arg8[%c0_164, %c0_165], %529 {strides = array<i32>} : memref<16x64xf32, #tpu.memory_space<vmem>>, vector<16x64xf32>,
    return
  }
}

</mosaic_0001>

<bundles_post_ra>
// kernel: tpu_custom_call.1
= control target key start
LH: loop header
LB: loop body
LE: loop exit
PB: predicated region body
PF: predicated region fallthrough
CT: control target
= control target key end

     0   :  { %16 = vsyncpa [#allocation5], 0  ;;  %s3625_s0 = inlined_call_operand.hbm [shape: f32[16,32], index: 0, kind: input, shape index: {}]   ;;  %s3626_s1 = inlined_call_operand.hbm [shape: f32[32,128], index: 1, kind: input, shape index: {}]   ;;  %s3627_s2 = inlined_call_operand.hbm [shape: f32[32,128], index: 2, kind: input, shape index: {}]   ;;  %s3628_s3 = inlined_call_operand.vmem [shape: f32[1,128], index: 3, kind: input, shape index: {}]   ;;  %s3629_s4 = inlined_call_operand.hbm [shape: f32[64,128], index: 4, kind: input, shape index: {}]   ;;  %s3630_s5 = inlined_call_operand.vmem [shape: f32[1,128], index: 5, kind: input, shape index: {}]   ;;  %s3631_s6 = inlined_call_operand.hbm [shape: f32[32,64], index: 6, kind: input, shape index: {}]   ;;  %s3632_s7 = inlined_call_operand.vmem [shape: f32[1,64], index: 7, kind: input, shape index: {}]   ;;  %s3633_s8 = inlined_call_operand.hbm [shape: f32[16,64], index: 8, kind: output, shape index: {0}]   ;;  %s3634_s9 = inlined_call_operand.hbm [shape: f32[2,2,32], index: 9, kind: output, shape index: {1}]   ;;  %s3635_s10 = inlined_call_operand.hbm [shape: f32[2,2,32], index: 10, kind: output, shape index: {2}]  }
   0x1   :  { %17 = vsyncpa [#allocation8], 0 }
   0x2   :  { %18 = vsyncpa [#allocation11], 0 }
   0x3   :  { %19 = vsyncpa [#allocation6], 0 }
   0x4   :  { %20 = vsyncpa [#allocation15], 0  ;;  %s3035_s13 = smov [#allocation7]   ;;  %s3036_s15 = smov [#allocation10]  }
   0x5   :  { %s38_s14 = sshll.u32 %s3035_s13, 4  ;;  %s64_s16 = sshll.u32 %s3036_s15, 4  ;;  %s39_s14 = int_to_ptr.vmem [resolvable:$true] %s38_s14  ;;  %s3107_s16 = int_to_ptr.vmem [resolvable:$true] %s64_s16 }
   0x6   :  { %s2849_s19 = scalar_lea.hbm %s3626_s1, 512 }
   0x7   :  { %p2850_p0 = scmp.ne.s32.totalorder %s3626_s1, %s2849_s19  ;;  %p2853_p1 = scmp.lt.u32.totalorder %s2849_s19, %s3626_s1 }
   0x9   :  { %p2855_p2 = pnand %p2853_p1, %p2850_p0 }
   0xb   :  { %2858 = shalt.err (!%p2855_p2)
}
   0xc   :  { %s2859_s24 = scalar_lea.vmem %s39_s14, 512  ;;  %p2864_p4 = scmp.lt.s32.totalorder %s39_s14, %s39_s14 }
   0xd   :  { %p2860_p3 = scmp.ne.s32.totalorder %s39_s14, %s2859_s24  ;;  %p2865_p5 = scmp.lt.s32.totalorder %s2859_s24, %s2859_s24 }
   0xf   :  { %p2866_p6 = por %p2865_p5, %p2864_p4 }
  0x11   :  { %p2867_p7 = pnand %p2866_p6, %p2860_p3 }
  0x13   :  { %2870 = shalt.err (!%p2867_p7)
}
  0x14   :  { %s3037_s25 = smov 128   ;;  %s3038_s26 = smov 8  }
  0x15   :  { %44 = dma.hbm_to_vmem [thread:$0]  %s3626_s1, 512, %s39_s14, [#allocation8], %s3037_s25, %s3037_s25, %s3038_s26  }
  0x16   :  { %s2871_s11 = scalar_lea.hbm %s3629_s4, 1024 }
  0x17   :  { %p2872_p8 = scmp.ne.s32.totalorder %s3629_s4, %s2871_s11  ;;  %p2875_p9 = scmp.lt.u32.totalorder %s2871_s11, %s3629_s4 }
  0x19   :  { %p2877_p10 = pnand %p2875_p9, %p2872_p8 }
  0x1b   :  { %2880 = shalt.err (!%p2877_p10)
}
  0x1c   :  { %s2881_s18 = scalar_lea.vmem %s3107_s16, 1024  ;;  %p2886_p12 = scmp.lt.s32.totalorder %s3107_s16, %s3107_s16 }
  0x1d   :  { %p2882_p11 = scmp.ne.s32.totalorder %s3107_s16, %s2881_s18  ;;  %p2887_p13 = scmp.lt.s32.totalorder %s2881_s18, %s2881_s18 }
  0x1f   :  { %p2888_p0 = por %p2887_p13, %p2886_p12 }
  0x21   :  { %p2889_p1 = pnand %p2888_p0, %p2882_p11 }
  0x23   :  { %2892 = shalt.err (!%p2889_p1)
}
  0x24   :  { %70 = dma.hbm_to_vmem [thread:$0]  %s3629_s4, 1024, %s3107_s16, [#allocation11], %s3037_s25, %s3037_s25, %s3038_s26  }
  0x25   :  { %s3039_s19 = smov [#allocation4]   ;;  %s3040_s21 = smov [#allocation9]  }
  0x26   :  { %s26_s20 = sshll.u32 %s3039_s19, 4  ;;  %s50_s22 = sshll.u32 %s3040_s21, 4  ;;  %s27_s20 = int_to_ptr.vmem [resolvable:$true] %s26_s20  ;;  %s3144_s22 = int_to_ptr.vmem [resolvable:$true] %s50_s22 }
  0x27   :  { %s2893_s27 = scalar_lea.hbm %s3625_s0, 256 }
  0x28   :  { %p2894_p2 = scmp.ne.s32.totalorder %s3625_s0, %s2893_s27  ;;  %p2897_p3 = scmp.lt.u32.totalorder %s2893_s27, %s3625_s0 }
  0x2a   :  { %p2899_p4 = pnand %p2897_p3, %p2894_p2 }
  0x2c   :  { %2902 = shalt.err (!%p2899_p4)
}
  0x2d   :  { %s2903_s4 = scalar_lea.vmem %s27_s20, 256  ;;  %p2908_p6 = scmp.lt.s32.totalorder %s27_s20, %s27_s20 }
  0x2e   :  { %p2904_p5 = scmp.ne.s32.totalorder %s27_s20, %s2903_s4  ;;  %p2909_p7 = scmp.lt.s32.totalorder %s2903_s4, %s2903_s4 }
  0x30   :  { %p2910_p8 = por %p2909_p7, %p2908_p6 }
  0x32   :  { %p2911_p9 = pnand %p2910_p8, %p2904_p5 }
  0x34   :  { %2914 = shalt.err (!%p2911_p9)
}
  0x35   :  { %32 = dma.hbm_to_vmem [thread:$0]  %s3625_s0, 256, %s27_s20, [#allocation5], %s3037_s25, %s3037_s25, %s3038_s26  }
  0x36   :  { %s2915_s17 = scalar_lea.hbm %s3627_s2, 512 }
  0x37   :  { %p2916_p10 = scmp.ne.s32.totalorder %s3627_s2, %s2915_s17  ;;  %p2919_p11 = scmp.lt.u32.totalorder %s2915_s17, %s3627_s2 }
  0x39   :  { %p2921_p12 = pnand %p2919_p11, %p2916_p10 }
  0x3b   :  { %2924 = shalt.err (!%p2921_p12)
}
  0x3c   :  { %s2925_s21 = scalar_lea.vmem %s3144_s22, 512  ;;  %p2930_p0 = scmp.lt.s32.totalorder %s3144_s22, %s3144_s22 }
  0x3d   :  { %p2926_p13 = scmp.ne.s32.totalorder %s3144_s22, %s2925_s21  ;;  %p2931_p1 = scmp.lt.s32.totalorder %s2925_s21, %s2925_s21 }
  0x3f   :  { %p2932_p2 = por %p2931_p1, %p2930_p0 }
  0x41   :  { %p2933_p3 = pnand %p2932_p2, %p2926_p13 }
  0x43   :  { %2936 = shalt.err (!%p2933_p3)
}
  0x44   :  { %56 = dma.hbm_to_vmem [thread:$0]  %s3627_s2, 512, %s3144_s22, [#allocation8], %s3037_s25, %s3037_s25, %s3038_s26  }
  0x45   :  { %s3041_s23 = smov [#allocation12]   ;;  %s2937_s29 = scalar_lea.hbm %s3631_s6, 512 }
  0x46   :  { %s78_s24 = sshll.u32 %s3041_s23, 4  ;;  %p2938_p4 = scmp.ne.s32.totalorder %s3631_s6, %s2937_s29  ;;  %s79_s24 = int_to_ptr.vmem [resolvable:$true] %s78_s24 }
  0x47   :  { %p2941_p5 = scmp.lt.u32.totalorder %s2937_s29, %s3631_s6 }
  0x49   :  { %p2943_p6 = pnand %p2941_p5, %p2938_p4 }
  0x4b   :  { %2946 = shalt.err (!%p2943_p6)
}
  0x4c   :  { %s2947_s12 = scalar_lea.vmem %s79_s24, 512  ;;  %p2952_p8 = scmp.lt.s32.totalorder %s79_s24, %s79_s24 }
  0x4d   :  { %p2948_p7 = scmp.ne.s32.totalorder %s79_s24, %s2947_s12  ;;  %p2953_p9 = scmp.lt.s32.totalorder %s2947_s12, %s2947_s12 }
  0x4f   :  { %p2954_p10 = por %p2953_p9, %p2952_p8 }
  0x51   :  { %p2955_p11 = pnand %p2954_p10, %p2948_p7 }
  0x53   :  { %2958 = shalt.err (!%p2955_p11)
}
  0x54   :  { %84 = dma.hbm_to_vmem [thread:$0]  %s3631_s6, 512, %s79_s24, [#allocation11], %s3037_s25, %s3037_s25, %s3038_s26  }
  0x55   :  { %3025 = dma.done.wait [#allocation5], 256  }
  0x56   :  { %3026 = vsyncadd [#allocation5], 4294967040 }
  0x57   :  { %3027 = dma.done.wait [#allocation8], 1024  }
  0x58   :  { %3028 = vsyncadd [#allocation8], 4294966272 }
  0x59   :  { %3029 = dma.done.wait [#allocation11], 1536  }
  0x5a   :  { %3030 = vsyncadd [#allocation11], 4294965760  ;;  %v3042_v0 = vmov 0.0|0.0   ;;  %vm3043_vm0 = vmmov 0   ;;  %v3044_v1 = vmov 0.0   ;;  %v104_v2 = vld [vmem:[#allocation7] sm:$0xff] }
  0x5b   :  { %2552 = vmatprep.subr.bf16.mxu1 %v3042_v0  ;;  %2301 = vmatprep.mubr.msk.f32.mxu1 %vm3043_vm0, %v3044_v1  ;;  %v105_v3 = vld [vmem:[#allocation7 + $0x8] sm:$0xff]  ;;  %v197_v4 = vld [vmem:[#allocation9] sm:$0xff]  ;;  %vm115_vm1 = vcmask 261120   ;;  %v106_v7 = vld [vmem:[#allocation7 + $0x10] sm:$0xff]  ;;  %s3045_s15 = smov 64   ;;  %vm216_vm2 = vcmask 517376  }
  0x5c   :  { %v2544_v5 = vpack.c.bf16 %v105_v3, %v104_v2  ;;  %v198_v6 = vld [vmem:[#allocation9 + $0x8] sm:$0xff]  ;;  %v107_v8 = vld [vmem:[#allocation7 + $0x18] sm:$0xff]  ;;  %v102_v11 = vld [vmem:[#allocation4] sm:$0xff]  ;;  %217 = vst.msk [vmem:[#allocation2] sm:$0x3] %vm216_vm2, %v3044_v1  ;;  %vm320_vm3 = vcmask 254976  }
  0x5d   :  { %v3199_v9 = vpack.c.bf16 %v198_v6, %v197_v4  ;;  %v2548_v10 = vpack.c.bf16 %v107_v8, %v106_v7  ;;  %v199_v12 = vld [vmem:[#allocation9 + $0x10] sm:$0xff]  ;;  %v200_v13 = vld [vmem:[#allocation9 + $0x18] sm:$0xff]  ;;  %2290 = vmatprep.mubr.msk.f32.mxu0 %vm115_vm1, %v102_v11  ;;  %v201_v34 = vld [vmem:[#allocation10] sm:$0xff]  ;;  %vm323_vm4 = vcmask 523264   ;;  %vm540_vm5 = vcmask 257026   ;;  %s3048_s1 = smov [#allocation14]  }
  0x5e   :  { %2545 = vmatprep.subr.bf16.mxu0 %v2544_v5  ;;  %v3203_v14 = vpack.c.bf16 %v200_v13, %v199_v12  ;;  %v103_v15 = vld [vmem:[#allocation4 + $0x8] sm:$0xff]  ;;  %v202_v35 = vld [vmem:[#allocation10 + $0x8] sm:$0xff]  ;;  %v203_v36 = vld [vmem:[#allocation10 + $0x10] sm:$0xff]  ;;  %vm760_vm6 = vcmask 259076   ;;  %vm980_vm7 = vcmask 261126   ;;  %vm429_vm8 = vcmask 253952  }
  0x5f   :  { %2547 = vmatpush3.bf16.msra.mxu0 %v2544_v5  ;;  %2554 = vmatpush3.bf16.msra.mxu1 %v3199_v9  ;;  %v2120_v16 = vld [vmem:[%s3628_s3] ss:$0 sm:$0xff]  ;;  %s3046_s3 = smov 32   ;;  %v3232_v37 = vpack.c.bf16 %v202_v35, %v201_v34  ;;  %v205_v41 = vld [vmem:[#allocation10 + $0x20] sm:$0xff]  ;;  %v206_v42 = vld [vmem:[#allocation10 + $0x28] sm:$0xff]  ;;  %vm431_vm9 = vcmask 254977  }
  0x60   :  { %2549 = vmatprep.subr.bf16.mxu0 %v2548_v10  ;;  %2555 = vmatprep.subr.bf16.mxu1 %v3042_v0  ;;  %v204_v38 = vld [vmem:[#allocation10 + $0x18] sm:$0xff]  ;;  %v3243_v43 = vpack.c.bf16 %v206_v42, %v205_v41  ;;  %v207_v44 = vld [vmem:[#allocation10 + $0x30] sm:$0xff]  ;;  %s2087_s14 = sshll.u32 %s3048_s1, 4  ;;  %s2088_s14 = int_to_ptr.vmem [resolvable:$true] %s2087_s14 }
  0x61   :  { %v3237_v39 = vpack.c.bf16 %v204_v38, %v203_v36  ;;  %v208_v45 = vld [vmem:[#allocation10 + $0x38] sm:$0xff]  ;;  %s2959_s19 = scalar_lea.vmem %s2088_s14, 64  ;;  %p2964_p13 = scmp.lt.s32.totalorder %s2088_s14, %s2088_s14 }
  0x62   :  { %v3247_v46 = vpack.c.bf16 %v208_v45, %v207_v44  ;;  %v3275_v55 = vld [vmem:[%s3630_s5] ss:$0 sm:$0xff]  ;;  %s3047_s5 = smov 96   ;;  %p2960_p12 = scmp.ne.s32.totalorder %s2088_s14, %s2959_s19 }
  0x63   :  { %2551 = vmatpush3.bf16.msra.mxu0 %v2548_v10  ;;  %2557 = vmatpush3.bf16.msra.mxu1 %v3203_v14  ;;  %p2965_p0 = scmp.lt.s32.totalorder %s2959_s19, %s2959_s19 }
  0x64   :  { %2558 = vmatprep.subr.bf16.mxu0 %v3042_v0  ;;  %2570 = vmatprep.subr.bf16.mxu1 %v3042_v0 }
  0x65   :  { %p2966_p1 = por %p2965_p0, %p2964_p13 }
  0x66   :  { %2291 = vmatmul.mubr.msk.f32.vlgmr.msra.gmra.mrb[0].mxu0 %vm115_vm1, %v103_v15  ;;  %2302 = vmatmul.mubr.f32.vlgmr.msra.gmra.mrb[0].mxu1 %v3044_v1 }
  0x67   :  { %2572 = vmatpush3.bf16.msra.mxu1 %v3199_v9  ;;  %2331 = vmatprep.mubr.msk.f32.mxu1 %vm3043_vm0, %v3044_v1  ;;  %p2967_p2 = pnand %p2966_p1, %p2960_p12 }
  0x68   :  { %2573 = vmatprep.subr.bf16.mxu1 %v3042_v0  ;;  %2320 = vmatprep.mubr.msk.f32.mxu0 %vm3043_vm0, %v3044_v1 }
  0x69   :  { %2560 = vmatpush3.bf16.msra.mxu0 %v3232_v37 }
  0x6a   :  { %2561 = vmatprep.subr.bf16.mxu0 %v3042_v0 }
  0x6b   :  { %2575 = vmatpush3.bf16.msra.mxu1 %v3203_v14 }
  0x6c   :  { %2576 = vmatprep.subr.bf16.mxu1 %v3042_v0 }
  0x6d   :  { %2563 = vmatpush3.bf16.msra.mxu0 %v3237_v39 }
  0x6e   :  { %2564 = vmatprep.subr.bf16.mxu0 %v3042_v0 }
  0x71   :  { %2566 = vmatpush3.bf16.msra.mxu0 %v3243_v43 }
  0x72   :  { %2567 = vmatprep.subr.bf16.mxu0 %v3042_v0 }
  0x75   :  { %2569 = vmatpush3.bf16.msra.mxu0 %v3247_v46 }
  0x76   :  { %2588 = vmatprep.subr.bf16.mxu0 %v3042_v0 }
 0x139   :  { %v2292_v17 = vpop.f32.mrb[0].mxu0  ;;  %v287_v18 = vpop.f32.mrb[0].mxu1 }
 0x13a   :  { %v3222_v19 = vadd.f32 %v2292_v17, %v2120_v16  ;;  %v188_v20 = vpop.f32.mrb[1].mxu0  ;;  %v2303_v21 = vpop.f32.mrb[1].mxu1 }
 0x13b   :  { %v3224_v22 = vadd.f32 %v2120_v16, %v188_v20 }
 0x13d   :  { %v291_v23 = vadd.f32 %v287_v18, %v3224_v22 }
 0x13f   :  { %2721 = vtanh.f32 %v291_v23  ;;  %v2124_v25 = vmul.f32 -1.442695, %v291_v23 }
 0x141   :  { %2723 = vpow2.f32 %v2124_v25 }
 0x149   :  { %v2722_v24 = vpop.eup %2721 }
 0x14a   :  { %301 = vrot.lane.b32.xlu0 %v2722_v24, %s3045_s15 }
 0x14b   :  { %v2724_v26 = vpop.eup %2723 }
 0x14c   :  { %v295_v27 = vadd.f32 1.0, %v2724_v26 }
 0x14e   :  { %2725 = vrcp.f32 %v295_v27 }
 0x158   :  { %v2726_v28 = vpop.eup %2725 }
 0x159   :  { %v299_v31 = vmul.f32 0.0, %v2726_v28 }
 0x1bc   :  { %v302_v29 = vpop.permute.xlu0 %301 }
 0x1bd   :  { %v304_v30 = vmul.f32 %v2726_v28, %v302_v29 }
 0x1bf   :  { %306 = vrot.lane.b32.xlu0 %v304_v30, %s3046_s3 }
 0x231   :  { %v307_v32 = vpop.permute.xlu0 %306 }
 0x232   :  { %v3229_v33 = vadd.f32 %v307_v32, %v299_v31 }
 0x234   :  { %2727 = vtanh.f32 %v3229_v33  ;;  %v517_v12 = vrot.slane %v3229_v33, 6 }
 0x23e   :  { %v2728_v40 = vpop.eup %2727 }
 0x23f   :  { %312 = vrot.lane.b32.xlu1 %v2728_v40, %s3045_s15 }
 0x2b1   :  { %v313_v47 = vpop.permute.xlu1 %312 }
 0x2b2   :  { %v315_v48 = vmul.f32 %v2726_v28, %v313_v47 }
 0x2b4   :  { %317 = vrot.lane.b32.xlu1 %v315_v48, %s3046_s3 }
 0x326   :  { %v318_v49 = vpop.permute.xlu1 %317 }
 0x327   :  { %321 = vst.msk [vmem:[#allocation2] sm:$0x3] %vm320_vm3, %v318_v49  ;;  %2332 = vmatmul.mubr.msk.f32.vlgmr.msra.gmra.mrb[2].mxu1 %vm115_vm1, %v318_v49 }
 0x328   :  { %2578 = vmatpush3.bf16.msra.mxu1 %v3232_v37  ;;  %2350 = vmatprep.mubr.msk.f32.mxu1 %vm3043_vm0, %v3044_v1 }
 0x329   :  { %2579 = vmatprep.subr.bf16.mxu1 %v3042_v0 }
 0x32c   :  { %2581 = vmatpush3.bf16.msra.mxu1 %v3237_v39 }
 0x32d   :  { %2582 = vmatprep.subr.bf16.mxu1 %v3042_v0 }
 0x32e   :  { %v322_v50 = vld [vmem:[#allocation2] sm:$0x3] }
 0x32f   :  { %2321 = vmatmul.mubr.msk.f32.vlgmr.msra.gmra.mrb[2].mxu0 %vm323_vm4, %v322_v50 }
 0x330   :  { %2590 = vmatpush3.bf16.msra.mxu0 %v3199_v9  ;;  %2584 = vmatpush3.bf16.msra.mxu1 %v3243_v43 }
 0x331   :  { %2591 = vmatprep.subr.bf16.mxu0 %v3042_v0  ;;  %2361 = vmatprep.mubr.msk.f32.mxu0 %vm3043_vm0, %v3044_v1 }
 0x332   :  { %2585 = vmatprep.subr.bf16.mxu1 %v3042_v0 }
 0x334   :  { %2593 = vmatpush3.bf16.msra.mxu0 %v3203_v14  ;;  %2587 = vmatpush3.bf16.msra.mxu1 %v3247_v46 }
 0x335   :  { %2594 = vmatprep.subr.bf16.mxu0 %v3042_v0  ;;  %2606 = vmatprep.subr.bf16.mxu1 %v3042_v0 }
 0x3fa   :  { %v501_v51 = vpop.f32.mrb[2].mxu1 }
 0x3fb   :  { %v506_v52 = vrot.slane %v501_v51, 6  ;;  %v2333_v53 = vpop.f32.mrb[3].mxu1 }
 0x3fd   :  { %v508_v54 = vadd.f32 %v506_v52, %v3224_v22 }
 0x3ff   :  { %2729 = vtanh.f32 %v508_v54  ;;  %v2128_v61 = vmul.f32 -1.442695, %v508_v54 }
 0x402   :  { %v393_v56 = vpop.f32.mrb[2].mxu0 }
 0x403   :  { %v394_v57 = vadd.f32 %v3275_v55, %v393_v56  ;;  %v2322_v58 = vpop.f32.mrb[3].mxu0 }
 0x405   :  { %2731 = vtanh.f32 %v394_v57  ;;  %v2126_v62 = vmul.f32 -1.442695, %v394_v57 }
 0x406   :  { %2733 = vpow2.f32 %v2128_v61 }
 0x407   :  { %2735 = vpow2.f32 %v2126_v62 }
 0x409   :  { %v2730_v59 = vpop.eup %2729 }
 0x40a   :  { %521 = vrot.lane.b32.xlu1 %v2730_v59, %s3045_s15 }
 0x40f   :  { %v2732_v60 = vpop.eup %2731 }
 0x410   :  { %406 = vrot.lane.b32.xlu0 %v2732_v60, %s3045_s15  ;;  %v2734_v63 = vpop.eup %2733 }
 0x411   :  { %v512_v2 = vadd.f32 1.0, %v2734_v63  ;;  %v2736_v3 = vpop.eup %2735 }
 0x412   :  { %v400_v4 = vadd.f32 1.0, %v2736_v3 }
 0x413   :  { %2737 = vrcp.f32 %v512_v2 }
 0x414   :  { %2739 = vrcp.f32 %v400_v4 }
 0x41d   :  { %v2738_v5 = vpop.eup %2737 }
 0x41e   :  { %v2740_v8 = vpop.eup %2739  ;;  %v519_v13 = vmul.f32 %v2738_v5, %v517_v12 }
 0x41f   :  { %v404_v17 = vmul.f32 0.0, %v2740_v8 }
 0x47c   :  { %v522_v6 = vpop.permute.xlu1 %521 }
 0x47d   :  { %v524_v7 = vmul.f32 %v2738_v5, %v522_v6 }
 0x47f   :  { %526 = vrot.lane.b32.xlu1 %v524_v7, %s3046_s3 }
 0x482   :  { %v407_v10 = vpop.permute.xlu0 %406 }
 0x483   :  { %v409_v11 = vmul.f32 %v2740_v8, %v407_v10 }
 0x485   :  { %411 = vrot.lane.b32.xlu0 %v409_v11, %s3046_s3 }
 0x4f1   :  { %v527_v15 = vpop.permute.xlu1 %526 }
 0x4f2   :  { %v3283_v16 = vadd.f32 %v527_v15, %v519_v13 }
 0x4f4   :  { %2741 = vtanh.f32 %v3283_v16  ;;  %v737_v59 = vrot.slane %v3283_v16, 6 }
 0x4f7   :  { %v412_v18 = vpop.permute.xlu0 %411 }
 0x4f8   :  { %v3286_v20 = vadd.f32 %v412_v18, %v404_v17 }
 0x4fa   :  { %2743 = vtanh.f32 %v3286_v20 }
 0x4fe   :  { %v2742_v21 = vpop.eup %2741 }
 0x4ff   :  { %532 = vrot.lane.b32.xlu1 %v2742_v21, %s3045_s15 }
 0x504   :  { %v2744_v23 = vpop.eup %2743 }
 0x505   :  { %417 = vrot.lane.b32.xlu0 %v2744_v23, %s3045_s15 }
 0x571   :  { %v533_v24 = vpop.permute.xlu1 %532 }
 0x572   :  { %v535_v25 = vmul.f32 %v2738_v5, %v533_v24 }
 0x574   :  { %537 = vrot.lane.b32.xlu1 %v535_v25, %s3046_s3  ;;  %v650_v28 = vrot.slane %v535_v25, 2 }
 0x577   :  { %v418_v26 = vpop.permute.xlu0 %417 }
 0x578   :  { %v3292_v27 = vmul.f32 %v2740_v8, %v418_v26 }
 0x57a   :  { %422 = vrot.lane.b32.xlu0 %v3292_v27, %s3045_s15 }
 0x57e   :  { %651 = vrot.lane.b32.xlu0 %v650_v28, %s3046_s3 }
 0x5e6   :  { %v538_v30 = vpop.permute.xlu1 %537 }
 0x5ec   :  { %v423_v29 = vpop.permute.xlu0 %422 }
 0x5ed   :  { %425 = vst.msk [vmem:[#allocation2] sm:$0x3] %vm216_vm2, %v423_v29 }
 0x5ee   :  { %541 = vst.msk [vmem:[#allocation2 - $0x2] sm:$0xc] %vm540_vm5, %v538_v30 }
 0x5f0   :  { %v652_v31 = vpop.permute.xlu0 %651 }
 0x5f1   :  { %2362 = vmatmul.mubr.msk.f32.vlgmr.msra.gmra.mrb[4].mxu0 %vm115_vm1, %v652_v31 }
 0x5f2   :  { %2596 = vmatpush3.bf16.msra.mxu0 %v3232_v37  ;;  %2380 = vmatprep.mubr.msk.f32.mxu0 %vm3043_vm0, %v3044_v1 }
 0x5f3   :  { %2597 = vmatprep.subr.bf16.mxu0 %v3042_v0 }
 0x5f5   :  { %v542_v32 = vld [vmem:[#allocation2] sm:$0x3] }
 0x5f6   :  { %2351 = vmatmul.mubr.msk.f32.vlgmr.msra.gmra.mrb[4].mxu1 %vm323_vm4, %v542_v32  ;;  %2599 = vmatpush3.bf16.msra.mxu0 %v3237_v39 }
 0x5f7   :  { %2608 = vmatpush3.bf16.msra.mxu1 %v3199_v9  ;;  %2600 = vmatprep.subr.bf16.mxu0 %v3042_v0 }
 0x5f8   :  { %2609 = vmatprep.subr.bf16.mxu1 %v3042_v0  ;;  %2391 = vmatprep.mubr.msk.f32.mxu1 %vm3043_vm0, %v3044_v1 }
 0x5fa   :  { %2602 = vmatpush3.bf16.msra.mxu0 %v3243_v43 }
 0x5fb   :  { %2611 = vmatpush3.bf16.msra.mxu1 %v3203_v14  ;;  %2603 = vmatprep.subr.bf16.mxu0 %v3042_v0 }
 0x5fc   :  { %2612 = vmatprep.subr.bf16.mxu1 %v3042_v0 }
 0x5fe   :  { %2605 = vmatpush3.bf16.msra.mxu0 %v3247_v46 }
 0x5ff   :  { %2624 = vmatprep.subr.bf16.mxu0 %v3042_v0 }
 0x6c4   :  { %v721_v33 = vpop.f32.mrb[4].mxu0 }
 0x6c5   :  { %v726_v34 = vrot.slane %v721_v33, 4  ;;  %v2363_v35 = vpop.f32.mrb[5].mxu0 }
 0x6c7   :  { %v728_v36 = vadd.f32 %v726_v34, %v3224_v22 }
 0x6c9   :  { %2745 = vtanh.f32 %v728_v36  ;;  %v612_v38 = vpop.f32.mrb[4].mxu1  ;;  %v2132_v45 = vmul.f32 -1.442695, %v728_v36 }
 0x6ca   :  { %v613_v40 = vadd.f32 %v3275_v55, %v612_v38  ;;  %v2352_v41 = vpop.f32.mrb[5].mxu1 }
 0x6cc   :  { %2747 = vtanh.f32 %v613_v40  ;;  %v2130_v47 = vmul.f32 -1.442695, %v613_v40 }
 0x6cd   :  { %2749 = vpow2.f32 %v2132_v45 }
 0x6ce   :  { %2751 = vpow2.f32 %v2130_v47 }
 0x6d3   :  { %v2746_v42 = vpop.eup %2745 }
 0x6d4   :  { %741 = vrot.lane.b32.xlu0 %v2746_v42, %s3045_s15 }
 0x6d6   :  { %v2748_v44 = vpop.eup %2747 }
 0x6d7   :  { %625 = vrot.lane.b32.xlu1 %v2748_v44, %s3045_s15  ;;  %v2750_v48 = vpop.eup %2749 }
 0x6d8   :  { %v2752_v49 = vpop.eup %2751  ;;  %v732_v50 = vadd.f32 1.0, %v2750_v48 }
 0x6d9   :  { %v619_v51 = vadd.f32 1.0, %v2752_v49 }
 0x6da   :  { %2753 = vrcp.f32 %v732_v50 }
 0x6db   :  { %2755 = vrcp.f32 %v619_v51 }
 0x6e4   :  { %v2754_v52 = vpop.eup %2753 }
 0x6e5   :  { %v2756_v56 = vpop.eup %2755  ;;  %v739_v60 = vmul.f32 %v2754_v52, %v737_v59 }
 0x6e6   :  { %v623_v63 = vmul.f32 %v2756_v56, %v3286_v20 }
 0x746   :  { %v742_v53 = vpop.permute.xlu0 %741 }
 0x747   :  { %v744_v54 = vmul.f32 %v2754_v52, %v742_v53 }
 0x749   :  { %v626_v57 = vpop.permute.xlu1 %625  ;;  %746 = vrot.lane.b32.xlu0 %v744_v54, %s3046_s3 }
 0x74a   :  { %v628_v58 = vmul.f32 %v2756_v56, %v626_v57 }
 0x74c   :  { %630 = vrot.lane.b32.xlu1 %v628_v58, %s3046_s3 }
 0x7bb   :  { %v747_v61 = vpop.permute.xlu0 %746 }
 0x7bc   :  { %v3324_v62 = vadd.f32 %v747_v61, %v739_v60 }
 0x7be   :  { %2757 = vtanh.f32 %v3324_v62  ;;  %v631_v2 = vpop.permute.xlu1 %630  ;;  %v957_v42 = vrot.slane %v3324_v62, 6 }
 0x7bf   :  { %v3328_v3 = vadd.f32 %v631_v2, %v623_v63 }
 0x7c1   :  { %2759 = vtanh.f32 %v3328_v3 }
 0x7c8   :  { %v2758_v4 = vpop.eup %2757 }
 0x7c9   :  { %752 = vrot.lane.b32.xlu0 %v2758_v4, %s3045_s15 }
 0x7cb   :  { %v2760_v5 = vpop.eup %2759 }
 0x7cc   :  { %636 = vrot.lane.b32.xlu1 %v2760_v5, %s3045_s15 }
 0x83b   :  { %v753_v6 = vpop.permute.xlu0 %752 }
 0x83c   :  { %v755_v7 = vmul.f32 %v2754_v52, %v753_v6 }
 0x83e   :  { %v637_v8 = vpop.permute.xlu1 %636  ;;  %757 = vrot.lane.b32.xlu0 %v755_v7, %s3046_s3  ;;  %v870_v11 = vrot.slane %v755_v7, 4 }
 0x83f   :  { %v3334_v10 = vmul.f32 %v2756_v56, %v637_v8 }
 0x841   :  { %641 = vrot.lane.b32.xlu1 %v3334_v10, %s3045_s15 }
 0x845   :  { %871 = vrot.lane.b32.xlu1 %v870_v11, %s3046_s3 }
 0x8b0   :  { %v758_v13 = vpop.permute.xlu0 %757 }
 0x8b3   :  { %v642_v12 = vpop.permute.xlu1 %641 }
 0x8b4   :  { %644 = vst.msk [vmem:[#allocation2] sm:$0x3] %vm216_vm2, %v642_v12 }
 0x8b5   :  { %761 = vst.msk [vmem:[#allocation2 - $0x4] sm:$0x30] %vm760_vm6, %v758_v13 }
 0x8b7   :  { %v872_v15 = vpop.permute.xlu1 %871 }
 0x8b8   :  { %2392 = vmatmul.mubr.msk.f32.vlgmr.msra.gmra.mrb[6].mxu1 %vm115_vm1, %v872_v15 }
 0x8b9   :  { %2614 = vmatpush3.bf16.msra.mxu1 %v3232_v37  ;;  %2410 = vmatprep.mubr.msk.f32.mxu1 %vm3043_vm0, %v3044_v1 }
 0x8ba   :  { %2615 = vmatprep.subr.bf16.mxu1 %v3042_v0 }
 0x8bc   :  { %v762_v16 = vld [vmem:[#allocation2] sm:$0x3] }
 0x8bd   :  { %2381 = vmatmul.mubr.msk.f32.vlgmr.msra.gmra.mrb[6].mxu0 %vm323_vm4, %v762_v16  ;;  %2617 = vmatpush3.bf16.msra.mxu1 %v3237_v39 }
 0x8be   :  { %2626 = vmatpush3.bf16.msra.mxu0 %v3199_v9  ;;  %2618 = vmatprep.subr.bf16.mxu1 %v3042_v0 }
 0x8bf   :  { %2627 = vmatprep.subr.bf16.mxu0 %v3042_v0  ;;  %2421 = vmatprep.mubr.msk.f32.mxu0 %vm3043_vm0, %v3044_v1 }
 0x8c1   :  { %2620 = vmatpush3.bf16.msra.mxu1 %v3243_v43 }
 0x8c2   :  { %2629 = vmatpush3.bf16.msra.mxu0 %v3203_v14  ;;  %2621 = vmatprep.subr.bf16.mxu1 %v3042_v0 }
 0x8c3   :  { %2630 = vmatprep.subr.bf16.mxu0 %v3042_v0 }
 0x8c5   :  { %2623 = vmatpush3.bf16.msra.mxu1 %v3247_v46 }
 0x8c6   :  { %2642 = vmatprep.subr.bf16.mxu1 %v3042_v0 }
 0x98b   :  { %v941_v17 = vpop.f32.mrb[6].mxu1 }
 0x98c   :  { %v946_v18 = vrot.slane %v941_v17, 2  ;;  %v2393_v20 = vpop.f32.mrb[7].mxu1 }
 0x98e   :  { %v948_v21 = vadd.f32 %v946_v18, %v3224_v22 }
 0x990   :  { %2761 = vtanh.f32 %v948_v21  ;;  %v832_v23 = vpop.f32.mrb[6].mxu0  ;;  %v2136_v29 = vmul.f32 -1.442695, %v948_v21 }
 0x991   :  { %v833_v24 = vadd.f32 %v3275_v55, %v832_v23  ;;  %v2382_v25 = vpop.f32.mrb[7].mxu0 }
 0x993   :  { %2763 = vtanh.f32 %v833_v24  ;;  %v2134_v30 = vmul.f32 -1.442695, %v833_v24 }
 0x994   :  { %2765 = vpow2.f32 %v2136_v29 }
 0x995   :  { %2767 = vpow2.f32 %v2134_v30 }
 0x99a   :  { %v2762_v26 = vpop.eup %2761 }
 0x99b   :  { %961 = vrot.lane.b32.xlu1 %v2762_v26, %s3045_s15 }
 0x99d   :  { %v2764_v28 = vpop.eup %2763 }
 0x99e   :  { %845 = vrot.lane.b32.xlu0 %v2764_v28, %s3045_s15  ;;  %v2766_v31 = vpop.eup %2765 }
 0x99f   :  { %v2768_v32 = vpop.eup %2767  ;;  %v952_v33 = vadd.f32 1.0, %v2766_v31 }
 0x9a0   :  { %v839_v22 = vadd.f32 1.0, %v2768_v32 }
 0x9a1   :  { %2769 = vrcp.f32 %v952_v33 }
 0x9a2   :  { %2771 = vrcp.f32 %v839_v22 }
 0x9ab   :  { %v2770_v34 = vpop.eup %2769 }
 0x9ac   :  { %v2772_v38 = vpop.eup %2771  ;;  %v959_v44 = vmul.f32 %v2770_v34, %v957_v42 }
 0x9ad   :  { %v843_v48 = vmul.f32 %v2772_v38, %v3328_v3 }
 0xa0d   :  { %v962_v35 = vpop.permute.xlu1 %961 }
 0xa0e   :  { %v964_v36 = vmul.f32 %v2770_v34, %v962_v35 }
 0xa10   :  { %966 = vrot.lane.b32.xlu1 %v964_v36, %s3046_s3  ;;  %v846_v40 = vpop.permute.xlu0 %845 }
 0xa11   :  { %v848_v41 = vmul.f32 %v2772_v38, %v846_v40 }
 0xa13   :  { %850 = vrot.lane.b32.xlu0 %v848_v41, %s3046_s3 }
 0xa82   :  { %v967_v45 = vpop.permute.xlu1 %966 }
 0xa83   :  { %v3366_v47 = vadd.f32 %v967_v45, %v959_v44 }
 0xa85   :  { %2773 = vtanh.f32 %v3366_v47  ;;  %v851_v49 = vpop.permute.xlu0 %850  ;;  %v1174_v26 = vrot.slane %v3366_v47, 6 }
 0xa86   :  { %v3370_v50 = vadd.f32 %v851_v49, %v843_v48 }
 0xa88   :  { %2775 = vtanh.f32 %v3370_v50 }
 0xa8f   :  { %v2774_v51 = vpop.eup %2773 }
 0xa90   :  { %972 = vrot.lane.b32.xlu1 %v2774_v51, %s3045_s15 }
 0xa92   :  { %v2776_v52 = vpop.eup %2775 }
 0xa93   :  { %856 = vrot.lane.b32.xlu0 %v2776_v52, %s3045_s15 }
 0xb02   :  { %v973_v53 = vpop.permute.xlu1 %972 }
 0xb03   :  { %v975_v54 = vmul.f32 %v2770_v34, %v973_v53 }
 0xb05   :  { %977 = vrot.lane.b32.xlu1 %v975_v54, %s3046_s3  ;;  %v857_v56 = vpop.permute.xlu0 %856  ;;  %v1090_v58 = vrot.slane %v975_v54, 6 }
 0xb06   :  { %v3376_v57 = vmul.f32 %v2772_v38, %v857_v56 }
 0xb08   :  { %861 = vrot.lane.b32.xlu0 %v3376_v57, %s3045_s15 }
 0xb0c   :  { %1091 = vrot.lane.b32.xlu0 %v1090_v58, %s3046_s3 }
 0xb77   :  { %v978_v60 = vpop.permute.xlu1 %977 }
 0xb7a   :  { %v862_v59 = vpop.permute.xlu0 %861 }
 0xb7b   :  { %864 = vst.msk [vmem:[#allocation2] sm:$0x3] %vm216_vm2, %v862_v59 }
 0xb7c   :  { %981 = vst.msk [vmem:[#allocation2 - $0x6] sm:$0xc0] %vm980_vm7, %v978_v60 }
 0xb7e   :  { %v1092_v61 = vpop.permute.xlu0 %1091 }
 0xb7f   :  { %2422 = vmatmul.mubr.msk.f32.vlgmr.msra.gmra.mrb[8].mxu0 %vm115_vm1, %v1092_v61 }
 0xb80   :  { %2632 = vmatpush3.bf16.msra.mxu0 %v3232_v37  ;;  %2440 = vmatprep.mubr.msk.f32.mxu0 %vm3043_vm0, %v3044_v1 }
 0xb81   :  { %2633 = vmatprep.subr.bf16.mxu0 %v3042_v0 }
 0xb83   :  { %v982_v62 = vld [vmem:[#allocation2] sm:$0x3] }
 0xb84   :  { %2411 = vmatmul.mubr.msk.f32.vlgmr.msra.gmra.mrb[8].mxu1 %vm323_vm4, %v982_v62  ;;  %2635 = vmatpush3.bf16.msra.mxu0 %v3237_v39 }
 0xb85   :  { %2644 = vmatpush3.bf16.msra.mxu1 %v3199_v9  ;;  %2451 = vmatprep.mubr.msk.f32.mxu1 %vm3043_vm0, %v3044_v1 }
 0xb86   :  { %2645 = vmatprep.subr.bf16.mxu1 %v3042_v0  ;;  %2636 = vmatprep.subr.bf16.mxu0 %v3042_v0 }
 0xb88   :  { %2638 = vmatpush3.bf16.msra.mxu0 %v3243_v43 }
 0xb89   :  { %2647 = vmatpush3.bf16.msra.mxu1 %v3203_v14  ;;  %2639 = vmatprep.subr.bf16.mxu0 %v3042_v0 }
 0xb8a   :  { %2648 = vmatprep.subr.bf16.mxu1 %v3042_v0 }
 0xb8c   :  { %2641 = vmatpush3.bf16.msra.mxu0 %v3247_v46 }
 0xb8d   :  { %2660 = vmatprep.subr.bf16.mxu0 %v3042_v0 }
 0xc52   :  { %v1161_v63 = vpop.f32.mrb[8].mxu0 }
 0xc53   :  { %v1165_v2 = vadd.f32 %v1161_v63, %v3222_v19  ;;  %v2423_v3 = vpop.f32.mrb[9].mxu0 }
 0xc55   :  { %2777 = vtanh.f32 %v1165_v2  ;;  %v2140_v11 = vmul.f32 -1.442695, %v1165_v2 }
 0xc57   :  { %v1052_v4 = vpop.f32.mrb[8].mxu1 }
 0xc58   :  { %v1053_v5 = vadd.f32 %v3275_v55, %v1052_v4  ;;  %v2412_v6 = vpop.f32.mrb[9].mxu1 }
 0xc5a   :  { %2779 = vtanh.f32 %v1053_v5  ;;  %v2138_v12 = vmul.f32 -1.442695, %v1053_v5 }
 0xc5b   :  { %2781 = vpow2.f32 %v2140_v11 }
 0xc5c   :  { %2783 = vpow2.f32 %v2138_v12 }
 0xc5f   :  { %v2778_v7 = vpop.eup %2777 }
 0xc60   :  { %1178 = vrot.lane.b32.xlu0 %v2778_v7, %s3045_s15 }
 0xc64   :  { %v2780_v8 = vpop.eup %2779 }
 0xc65   :  { %1065 = vrot.lane.b32.xlu1 %v2780_v8, %s3045_s15  ;;  %v2782_v13 = vpop.eup %2781 }
 0xc66   :  { %v1169_v15 = vadd.f32 1.0, %v2782_v13  ;;  %v2784_v16 = vpop.eup %2783 }
 0xc67   :  { %v1059_v17 = vadd.f32 1.0, %v2784_v16 }
 0xc68   :  { %2785 = vrcp.f32 %v1169_v15 }
 0xc69   :  { %2787 = vrcp.f32 %v1059_v17 }
 0xc72   :  { %v2786_v18 = vpop.eup %2785 }
 0xc73   :  { %v2788_v23 = vpop.eup %2787  ;;  %v1176_v28 = vmul.f32 %v2786_v18, %v1174_v26 }
 0xc74   :  { %v1063_v31 = vmul.f32 %v2788_v23, %v3370_v50 }
 0xcd2   :  { %v1179_v20 = vpop.permute.xlu0 %1178 }
 0xcd3   :  { %v1181_v21 = vmul.f32 %v2786_v18, %v1179_v20 }
 0xcd5   :  { %1183 = vrot.lane.b32.xlu0 %v1181_v21, %s3046_s3 }
 0xcd7   :  { %v1066_v24 = vpop.permute.xlu1 %1065 }
 0xcd8   :  { %v1068_v25 = vmul.f32 %v2788_v23, %v1066_v24 }
 0xcda   :  { %1070 = vrot.lane.b32.xlu1 %v1068_v25, %s3046_s3 }
 0xd47   :  { %v1184_v29 = vpop.permute.xlu0 %1183 }
 0xd48   :  { %v3408_v30 = vadd.f32 %v1184_v29, %v1176_v28 }
 0xd4a   :  { %2789 = vtanh.f32 %v3408_v30  ;;  %v1390_v7 = vrot.slane %v3408_v30, 6 }
 0xd4c   :  { %v1071_v32 = vpop.permute.xlu1 %1070 }
 0xd4d   :  { %v3412_v33 = vadd.f32 %v1071_v32, %v1063_v31 }
 0xd4f   :  { %2791 = vtanh.f32 %v3412_v33 }
 0xd54   :  { %v2790_v22 = vpop.eup %2789 }
 0xd55   :  { %1189 = vrot.lane.b32.xlu0 %v2790_v22, %s3045_s15 }
 0xd59   :  { %v2792_v34 = vpop.eup %2791 }
 0xd5a   :  { %1076 = vrot.lane.b32.xlu1 %v2792_v34, %s3045_s15 }
 0xdc7   :  { %v1190_v35 = vpop.permute.xlu0 %1189 }
 0xdc8   :  { %v1192_v36 = vmul.f32 %v2786_v18, %v1190_v35 }
 0xdca   :  { %1194 = vrot.lane.b32.xlu0 %v1192_v36, %s3046_s3 }
 0xdcc   :  { %v1077_v38 = vpop.permute.xlu1 %1076 }
 0xdcd   :  { %v3418_v40 = vmul.f32 %v2788_v23, %v1077_v38 }
 0xdcf   :  { %1081 = vrot.lane.b32.xlu1 %v3418_v40, %s3045_s15 }
 0xe3c   :  { %v1195_v41 = vpop.permute.xlu0 %1194 }
 0xe3d   :  { %2452 = vmatmul.mubr.msk.f32.vlgmr.msra.gmra.mrb[10].mxu1 %vm115_vm1, %v1195_v41 }
 0xe3e   :  { %2650 = vmatpush3.bf16.msra.mxu1 %v3232_v37  ;;  %2470 = vmatprep.mubr.msk.f32.mxu1 %vm3043_vm0, %v3044_v1 }
 0xe3f   :  { %2651 = vmatprep.subr.bf16.mxu1 %v3042_v0 }
 0xe41   :  { %v1082_v42 = vpop.permute.xlu1 %1081 }
 0xe42   :  { %1084 = vst.msk [vmem:[#allocation2] sm:$0x3] %vm216_vm2, %v1082_v42  ;;  %2653 = vmatpush3.bf16.msra.mxu1 %v3237_v39 }
 0xe43   :  { %1197 = vst.msk [vmem:[#allocation2] sm:$0x3] %vm320_vm3, %v1195_v41  ;;  %2654 = vmatprep.subr.bf16.mxu1 %v3042_v0 }
 0xe46   :  { %2656 = vmatpush3.bf16.msra.mxu1 %v3243_v43 }
 0xe47   :  { %2657 = vmatprep.subr.bf16.mxu1 %v3042_v0 }
 0xe4a   :  { %v1198_v44 = vld [vmem:[#allocation2] sm:$0x3]  ;;  %2659 = vmatpush3.bf16.msra.mxu1 %v3247_v46 }
 0xe4b   :  { %2441 = vmatmul.mubr.msk.f32.vlgmr.msra.gmra.mrb[10].mxu0 %vm323_vm4, %v1198_v44  ;;  %2678 = vmatprep.subr.bf16.mxu1 %v3042_v0 }
 0xe4c   :  { %2662 = vmatpush3.bf16.msra.mxu0 %v3199_v9  ;;  %2481 = vmatprep.mubr.msk.f32.mxu0 %vm3043_vm0, %v3044_v1 }
 0xe4d   :  { %2663 = vmatprep.subr.bf16.mxu0 %v3042_v0 }
 0xe50   :  { %2665 = vmatpush3.bf16.msra.mxu0 %v3203_v14 }
 0xe51   :  { %2666 = vmatprep.subr.bf16.mxu0 %v3042_v0 }
 0xf10   :  { %v1374_v45 = vpop.f32.mrb[10].mxu1 }
 0xf11   :  { %v1379_v47 = vrot.slane %v1374_v45, 6  ;;  %v2453_v48 = vpop.f32.mrb[11].mxu1 }
 0xf13   :  { %v1381_v49 = vadd.f32 %v1379_v47, %v3222_v19 }
 0xf15   :  { %2793 = vtanh.f32 %v1381_v49  ;;  %v2144_v56 = vmul.f32 -1.442695, %v1381_v49 }
 0xf1e   :  { %v1268_v50 = vpop.f32.mrb[10].mxu0 }
 0xf1f   :  { %v2794_v51 = vpop.eup %2793  ;;  %v1269_v52 = vadd.f32 %v3275_v55, %v1268_v50  ;;  %v2442_v53 = vpop.f32.mrb[11].mxu0 }
 0xf20   :  { %1394 = vrot.lane.b32.xlu0 %v2794_v51, %s3045_s15 }
 0xf21   :  { %2795 = vtanh.f32 %v1269_v52  ;;  %v2142_v58 = vmul.f32 -1.442695, %v1269_v52 }
 0xf22   :  { %2797 = vpow2.f32 %v2144_v56 }
 0xf23   :  { %2799 = vpow2.f32 %v2142_v58 }
 0xf2b   :  { %v2796_v54 = vpop.eup %2795 }
 0xf2c   :  { %1281 = vrot.lane.b32.xlu1 %v2796_v54, %s3045_s15  ;;  %v2798_v59 = vpop.eup %2797 }
 0xf2d   :  { %v1385_v60 = vadd.f32 1.0, %v2798_v59  ;;  %v2800_v61 = vpop.eup %2799 }
 0xf2e   :  { %v1275_v62 = vadd.f32 1.0, %v2800_v61 }
 0xf2f   :  { %2801 = vrcp.f32 %v1385_v60 }
 0xf30   :  { %2803 = vrcp.f32 %v1275_v62 }
 0xf39   :  { %v2802_v63 = vpop.eup %2801 }
 0xf3a   :  { %v2804_v4 = vpop.eup %2803  ;;  %v1392_v8 = vmul.f32 %v2802_v63, %v1390_v7 }
 0xf3b   :  { %v1279_v13 = vmul.f32 %v2804_v4, %v3412_v33 }
 0xf92   :  { %v1395_v2 = vpop.permute.xlu0 %1394 }
 0xf93   :  { %v1397_v3 = vmul.f32 %v2802_v63, %v1395_v2 }
 0xf95   :  { %1399 = vrot.lane.b32.xlu0 %v1397_v3, %s3046_s3 }
 0xf9e   :  { %v1282_v5 = vpop.permute.xlu1 %1281 }
 0xf9f   :  { %v1284_v6 = vmul.f32 %v2804_v4, %v1282_v5 }
 0xfa1   :  { %1286 = vrot.lane.b32.xlu1 %v1284_v6, %s3046_s3 }
0x1007   :  { %v1400_v11 = vpop.permute.xlu0 %1399 }
0x1008   :  { %v3449_v12 = vadd.f32 %v1400_v11, %v1392_v8 }
0x100a   :  { %2805 = vtanh.f32 %v3449_v12  ;;  %v1609_v54 = vrot.slane %v3449_v12, 6 }
0x1013   :  { %v1287_v15 = vpop.permute.xlu1 %1286 }
0x1014   :  { %v2806_v16 = vpop.eup %2805  ;;  %v3453_v17 = vadd.f32 %v1287_v15, %v1279_v13 }
0x1015   :  { %1405 = vrot.lane.b32.xlu0 %v2806_v16, %s3045_s15 }
0x1016   :  { %2807 = vtanh.f32 %v3453_v17 }
0x1020   :  { %v2808_v18 = vpop.eup %2807 }
0x1021   :  { %1292 = vrot.lane.b32.xlu1 %v2808_v18, %s3045_s15 }
0x1087   :  { %v1406_v20 = vpop.permute.xlu0 %1405 }
0x1088   :  { %v1408_v21 = vmul.f32 %v2802_v63, %v1406_v20 }
0x108a   :  { %1410 = vrot.lane.b32.xlu0 %v1408_v21, %s3046_s3  ;;  %v1522_v25 = vrot.slane %v1408_v21, 2 }
0x1093   :  { %v1293_v23 = vpop.permute.xlu1 %1292 }
0x1094   :  { %v3459_v24 = vmul.f32 %v2804_v4, %v1293_v23 }
0x1096   :  { %1297 = vrot.lane.b32.xlu1 %v3459_v24, %s3045_s15 }
0x109a   :  { %1523 = vrot.lane.b32.xlu1 %v1522_v25, %s3046_s3 }
0x10fc   :  { %v1411_v28 = vpop.permute.xlu0 %1410 }
0x1108   :  { %v1298_v26 = vpop.permute.xlu1 %1297 }
0x1109   :  { %1300 = vst.msk [vmem:[#allocation2] sm:$0x3] %vm216_vm2, %v1298_v26 }
0x110a   :  { %1413 = vst.msk [vmem:[#allocation2 - $0x2] sm:$0xc] %vm540_vm5, %v1411_v28 }
0x110c   :  { %v1524_v29 = vpop.permute.xlu1 %1523 }
0x110d   :  { %2482 = vmatmul.mubr.msk.f32.vlgmr.msra.gmra.mrb[12].mxu0 %vm115_vm1, %v1524_v29 }
0x110e   :  { %2668 = vmatpush3.bf16.msra.mxu0 %v3232_v37  ;;  %2500 = vmatprep.mubr.msk.f32.mxu0 %vm3043_vm0, %v3044_v1 }
0x110f   :  { %2669 = vmatprep.subr.bf16.mxu0 %v3042_v0 }
0x1111   :  { %v1414_v30 = vld [vmem:[#allocation2] sm:$0x3] }
0x1112   :  { %2471 = vmatmul.mubr.msk.f32.vlgmr.msra.gmra.mrb[12].mxu1 %vm323_vm4, %v1414_v30  ;;  %2671 = vmatpush3.bf16.msra.mxu0 %v3237_v39 }
0x1113   :  { %2680 = vmatpush3.bf16.msra.mxu1 %v3199_v9  ;;  %2672 = vmatprep.subr.bf16.mxu0 %v3042_v0 }
0x1114   :  { %2681 = vmatprep.subr.bf16.mxu1 %v3042_v0  ;;  %2511 = vmatprep.mubr.msk.f32.mxu1 %vm3043_vm0, %v3044_v1 }
0x1116   :  { %2674 = vmatpush3.bf16.msra.mxu0 %v3243_v43 }
0x1117   :  { %2683 = vmatpush3.bf16.msra.mxu1 %v3203_v14  ;;  %2675 = vmatprep.subr.bf16.mxu0 %v3042_v0 }
0x1118   :  { %2684 = vmatprep.subr.bf16.mxu1 %v3042_v0 }
0x111a   :  { %2677 = vmatpush3.bf16.msra.mxu0 %v3247_v46 }
0x11e0   :  { %v1593_v31 = vpop.f32.mrb[12].mxu0 }
0x11e1   :  { %v1598_v32 = vrot.slane %v1593_v31, 4  ;;  %v2483_v9 = vpop.f32.mrb[13].mxu0 }
0x11e3   :  { %v1600_v33 = vadd.f32 %v1598_v32, %v3222_v19 }
0x11e5   :  { %2809 = vtanh.f32 %v1600_v33  ;;  %v1484_v22 = vpop.f32.mrb[12].mxu1  ;;  %v2148_v38 = vmul.f32 -1.442695, %v1600_v33 }
0x11e6   :  { %v1485_v34 = vadd.f32 %v3275_v55, %v1484_v22  ;;  %v2472_v35 = vpop.f32.mrb[13].mxu1 }
0x11e8   :  { %2811 = vtanh.f32 %v1485_v34  ;;  %v2146_v41 = vmul.f32 -1.442695, %v1485_v34 }
0x11e9   :  { %2813 = vpow2.f32 %v2148_v38 }
0x11ea   :  { %2815 = vpow2.f32 %v2146_v41 }
0x11ef   :  { %v2810_v36 = vpop.eup %2809 }
0x11f0   :  { %1613 = vrot.lane.b32.xlu1 %v2810_v36, %s3045_s15 }
0x11f2   :  { %v2812_v14 = vpop.eup %2811 }
0x11f3   :  { %1497 = vrot.lane.b32.xlu0 %v2812_v14, %s3045_s15  ;;  %v2814_v42 = vpop.eup %2813 }
0x11f4   :  { %v2816_v44 = vpop.eup %2815  ;;  %v1604_v45 = vadd.f32 1.0, %v2814_v42 }
0x11f5   :  { %v1491_v47 = vadd.f32 1.0, %v2816_v44 }
0x11f6   :  { %2817 = vrcp.f32 %v1604_v45 }
0x11f7   :  { %2819 = vrcp.f32 %v1491_v47 }
0x1200   :  { %v2818_v48 = vpop.eup %2817 }
0x1201   :  { %v2820_v51 = vpop.eup %2819  ;;  %v1611_v56 = vmul.f32 %v2818_v48, %v1609_v54 }
0x1202   :  { %v1495_v60 = vmul.f32 %v2820_v51, %v3453_v17 }
0x1262   :  { %v1614_v49 = vpop.permute.xlu1 %1613 }
0x1263   :  { %v1616_v50 = vmul.f32 %v2818_v48, %v1614_v49 }
0x1265   :  { %v1498_v52 = vpop.permute.xlu0 %1497  ;;  %1618 = vrot.lane.b32.xlu1 %v1616_v50, %s3046_s3 }
0x1266   :  { %v1500_v53 = vmul.f32 %v2820_v51, %v1498_v52 }
0x1268   :  { %1502 = vrot.lane.b32.xlu0 %v1500_v53, %s3046_s3 }
0x12d7   :  { %v1619_v58 = vpop.permute.xlu1 %1618 }
0x12d8   :  { %v3490_v59 = vadd.f32 %v1619_v58, %v1611_v56 }
0x12da   :  { %2821 = vtanh.f32 %v3490_v59  ;;  %v1503_v61 = vpop.permute.xlu0 %1502  ;;  %v1828_v9 = vrot.slane %v3490_v59, 6 }
0x12db   :  { %v3494_v62 = vadd.f32 %v1503_v61, %v1495_v60 }
0x12dd   :  { %2823 = vtanh.f32 %v3494_v62 }
0x12e4   :  { %v2822_v63 = vpop.eup %2821 }
0x12e5   :  { %1624 = vrot.lane.b32.xlu1 %v2822_v63, %s3045_s15 }
0x12e7   :  { %v2824_v2 = vpop.eup %2823 }
0x12e8   :  { %1508 = vrot.lane.b32.xlu0 %v2824_v2, %s3045_s15 }
0x1357   :  { %v1625_v3 = vpop.permute.xlu1 %1624 }
0x1358   :  { %v1627_v4 = vmul.f32 %v2818_v48, %v1625_v3 }
0x135a   :  { %v1509_v5 = vpop.permute.xlu0 %1508  ;;  %1629 = vrot.lane.b32.xlu1 %v1627_v4, %s3046_s3  ;;  %v1741_v7 = vrot.slane %v1627_v4, 4 }
0x135b   :  { %v3500_v6 = vmul.f32 %v2820_v51, %v1509_v5 }
0x135d   :  { %1513 = vrot.lane.b32.xlu0 %v3500_v6, %s3045_s15 }
0x1361   :  { %1742 = vrot.lane.b32.xlu0 %v1741_v7, %s3046_s3  ;;  %v1976_v7 = vld [vmem:[#allocation12] sm:$0xff] }
0x13cc   :  { %v1630_v11 = vpop.permute.xlu1 %1629 }
0x13cf   :  { %v1514_v8 = vpop.permute.xlu0 %1513 }
0x13d0   :  { %1516 = vst.msk [vmem:[#allocation2] sm:$0x3] %vm216_vm2, %v1514_v8  ;;  %v1977_v8 = vld [vmem:[#allocation12 + $0x8] sm:$0xff] }
0x13d1   :  { %1632 = vst.msk [vmem:[#allocation2 - $0x4] sm:$0x30] %vm760_vm6, %v1630_v11  ;;  %v2696_v11 = vpack.c.bf16 %v1977_v8, %v1976_v7 }
0x13d3   :  { %v1743_v12 = vpop.permute.xlu0 %1742  ;;  %2697 = vmatprep.subr.bf16.mxu0 %v2696_v11 }
0x13d4   :  { %2512 = vmatmul.mubr.msk.f32.vlgmr.msra.gmra.mrb[14].mxu1 %vm115_vm1, %v1743_v12  ;;  %v1978_v12 = vld [vmem:[#allocation12 + $0x10] sm:$0xff] }
0x13d5   :  { %2686 = vmatpush3.bf16.msra.mxu1 %v3232_v37  ;;  %2530 = vmatprep.mubr.msk.f32.mxu1 %vm3043_vm0, %v3044_v1 }
0x13d6   :  { %2687 = vmatprep.subr.bf16.mxu1 %v3042_v0 }
0x13d8   :  { %v1633_v13 = vld [vmem:[#allocation2] sm:$0x3] }
0x13d9   :  { %2501 = vmatmul.mubr.msk.f32.vlgmr.msra.gmra.mrb[14].mxu0 %vm323_vm4, %v1633_v13  ;;  %2689 = vmatpush3.bf16.msra.mxu1 %v3237_v39  ;;  %v1979_v13 = vld [vmem:[#allocation12 + $0x18] sm:$0xff] }
0x13da   :  { %2690 = vmatprep.subr.bf16.mxu1 %v3042_v0  ;;  %2699 = vmatpush3.bf16.msra.mxu0 %v2696_v11 }
0x13dd   :  { %2692 = vmatpush3.bf16.msra.mxu1 %v3243_v43 }
0x13de   :  { %2693 = vmatprep.subr.bf16.mxu1 %v3042_v0 }
0x13e1   :  { %2695 = vmatpush3.bf16.msra.mxu1 %v3247_v46 }
0x14a7   :  { %v1812_v15 = vpop.f32.mrb[14].mxu1 }
0x14a8   :  { %v1817_v37 = vrot.slane %v1812_v15, 2  ;;  %v2513_v16 = vpop.f32.mrb[15].mxu1  ;;  %v2700_v15 = vpack.c.bf16 %v1979_v13, %v1978_v12 }
0x14aa   :  { %v1819_v1 = vadd.f32 %v1817_v37, %v3222_v19  ;;  %2701 = vmatprep.subr.bf16.mxu0 %v2700_v15 }
0x14ab   :  { %2703 = vmatpush3.bf16.msra.mxu0 %v2700_v15 }
0x14ac   :  { %2825 = vtanh.f32 %v1819_v1  ;;  %v1703_v17 = vpop.f32.mrb[14].mxu0  ;;  %v2152_v0 = vmul.f32 -1.442695, %v1819_v1 }
0x14ad   :  { %v1704_v18 = vadd.f32 %v3275_v55, %v1703_v17  ;;  %v2502_v20 = vpop.f32.mrb[15].mxu0 }
0x14af   :  { %2827 = vtanh.f32 %v1704_v18  ;;  %v2150_v43 = vmul.f32 -1.442695, %v1704_v18 }
0x14b0   :  { %2829 = vpow2.f32 %v2152_v0 }
0x14b1   :  { %2831 = vpow2.f32 %v2150_v43 }
0x14b6   :  { %v2826_v39 = vpop.eup %2825 }
0x14b7   :  { %1832 = vrot.lane.b32.xlu0 %v2826_v39, %s3045_s15 }
0x14b9   :  { %v2828_v21 = vpop.eup %2827 }
0x14ba   :  { %1716 = vrot.lane.b32.xlu1 %v2828_v21, %s3045_s15  ;;  %v2830_v46 = vpop.eup %2829 }
0x14bb   :  { %v2832_v23 = vpop.eup %2831  ;;  %v1823_v25 = vadd.f32 1.0, %v2830_v46 }
0x14bc   :  { %v1710_v19 = vadd.f32 1.0, %v2832_v23 }
0x14bd   :  { %2833 = vrcp.f32 %v1823_v25 }
0x14be   :  { %2835 = vrcp.f32 %v1710_v19 }
0x14c7   :  { %v2834_v26 = vpop.eup %2833 }
0x14c8   :  { %v2836_v30 = vpop.eup %2835  ;;  %v1830_v33 = vmul.f32 %v2834_v26, %v1828_v9 }
0x14c9   :  { %v1714_v35 = vmul.f32 %v2836_v30, %v3494_v62 }
0x1529   :  { %v1833_v28 = vpop.permute.xlu0 %1832 }
0x152a   :  { %v1835_v29 = vmul.f32 %v2834_v26, %v1833_v28 }
0x152c   :  { %1837 = vrot.lane.b32.xlu0 %v1835_v29, %s3046_s3  ;;  %v1717_v31 = vpop.permute.xlu1 %1716 }
0x152d   :  { %v1719_v32 = vmul.f32 %v2836_v30, %v1717_v31 }
0x152f   :  { %1721 = vrot.lane.b32.xlu1 %v1719_v32, %s3046_s3 }
0x159e   :  { %v1838_v22 = vpop.permute.xlu0 %1837 }
0x159f   :  { %v1840_v34 = vadd.f32 %v1838_v22, %v1830_v33 }
0x15a1   :  { %2837 = vtanh.f32 %v1840_v34  ;;  %v1722_v36 = vpop.permute.xlu1 %1721 }
0x15a2   :  { %v1724_v14 = vadd.f32 %v1722_v36, %v1714_v35 }
0x15a4   :  { %2839 = vtanh.f32 %v1724_v14 }
0x15ab   :  { %v2838_v38 = vpop.eup %2837 }
0x15ac   :  { %1843 = vrot.lane.b32.xlu0 %v2838_v38, %s3045_s15 }
0x15ae   :  { %v2840_v41 = vpop.eup %2839 }
0x15af   :  { %1727 = vrot.lane.b32.xlu1 %v2840_v41, %s3045_s15 }
0x161e   :  { %v1844_v42 = vpop.permute.xlu0 %1843 }
0x161f   :  { %v1846_v44 = vmul.f32 %v2834_v26, %v1844_v42 }
0x1621   :  { %1848 = vrot.lane.b32.xlu0 %v1846_v44, %s3046_s3  ;;  %v1728_v45 = vpop.permute.xlu1 %1727 }
0x1622   :  { %v1730_v47 = vmul.f32 %v2836_v30, %v1728_v45 }
0x1624   :  { %1732 = vrot.lane.b32.xlu1 %v1730_v47, %s3045_s15 }
0x1693   :  { %v1849_v48 = vpop.permute.xlu0 %1848 }
0x1694   :  { %1960 = vst.msk [vmem:[#allocation14 - $0x6] sm:$0xc0] %vm980_vm7, %v1849_v48 }
0x1696   :  { %v1733_v49 = vpop.permute.xlu1 %1732 }
0x1697   :  { %1735 = vst.msk [vmem:[#allocation2] sm:$0x3] %vm216_vm2, %v1733_v49 }
0x1698   :  { %1851 = vst.msk [vmem:[#allocation2 - $0x6] sm:$0xc0] %vm980_vm7, %v1849_v48 }
0x169f   :  { %v1852_v50 = vld [vmem:[#allocation2] sm:$0x3] }
0x16a0   :  { %2531 = vmatmul.mubr.msk.f32.vlgmr.msra.gmra.mrb[16].mxu1 %vm323_vm4, %v1852_v50 }
0x1773   :  { %v1922_v51 = vpop.f32.mrb[16].mxu1 }
0x1774   :  { %v1923_v52 = vadd.f32 %v3275_v55, %v1922_v51  ;;  %v2532_v53 = vpop.f32.mrb[17].mxu1 }
0x1776   :  { %2841 = vtanh.f32 %v1923_v52  ;;  %v2154_v56 = vmul.f32 -1.442695, %v1923_v52 }
0x1778   :  { %2843 = vpow2.f32 %v2154_v56 }
0x1780   :  { %v2842_v54 = vpop.eup %2841 }
0x1781   :  { %1935 = vrot.lane.b32.xlu1 %v2842_v54, %s3045_s15 }
0x1782   :  { %v2844_v58 = vpop.eup %2843 }
0x1783   :  { %v1929_v59 = vadd.f32 1.0, %v2844_v58 }
0x1785   :  { %2845 = vrcp.f32 %v1929_v59 }
0x178f   :  { %v2846_v60 = vpop.eup %2845 }
0x1790   :  { %v1933_v55 = vmul.f32 %v2846_v60, %v1724_v14 }
0x17f3   :  { %v1936_v61 = vpop.permute.xlu1 %1935 }
0x17f4   :  { %v1938_v62 = vmul.f32 %v2846_v60, %v1936_v61 }
0x17f6   :  { %1940 = vrot.lane.b32.xlu0 %v1938_v62, %s3046_s3 }
0x17fa   :  { %426 = vrot.lane.b32.xlu0 %v3292_v27, %s3046_s3 }
0x17fe   :  { %865 = vrot.lane.b32.xlu0 %v3376_v57, %s3046_s3 }
0x1802   :  { %1301 = vrot.lane.b32.xlu0 %v3459_v24, %s3046_s3 }
0x1806   :  { %1736 = vrot.lane.b32.xlu0 %v1730_v47, %s3046_s3 }
0x180a   :  { %1964 = vrot.lane.b32.xlu0 %v1840_v34, %s3047_s5 }
0x1868   :  { %v1941_v63 = vpop.permute.xlu0 %1940 }
0x1869   :  { %v1943_v2 = vadd.f32 %v1941_v63, %v1933_v55 }
0x186b   :  { %2847 = vtanh.f32 %v1943_v2 }
0x186c   :  { %v427_v3 = vpop.permute.xlu0 %426 }
0x186d   :  { %430 = vst.msk [vmem:[#allocation3] sm:$0x1] %vm429_vm8, %v427_v3 }
0x186e   :  { %432 = vst.msk [vmem:[#allocation3 + $0x7] sm:$0x2] %vm431_vm9, %v427_v3 }
0x1870   :  { %v866_v27 = vpop.permute.xlu0 %865 }
0x1871   :  { %868 = vst.msk [vmem:[#allocation3 + $0x2] sm:$0x1] %vm429_vm8, %v866_v27 }
0x1872   :  { %869 = vst.msk [vmem:[#allocation3 + $0x9] sm:$0x2] %vm431_vm9, %v866_v27 }
0x1874   :  { %v1302_v57 = vpop.permute.xlu0 %1301 }
0x1875   :  { %v2848_v24 = vpop.eup %2847  ;;  %1304 = vst.msk [vmem:[#allocation3 + $0x4] sm:$0x1] %vm429_vm8, %v1302_v57 }
0x1876   :  { %1305 = vst.msk [vmem:[#allocation3 + $0xb] sm:$0x2] %vm431_vm9, %v1302_v57  ;;  %1946 = vrot.lane.b32.xlu1 %v2848_v24, %s3045_s15 }
0x1878   :  { %v1737_v4 = vpop.permute.xlu0 %1736 }
0x1879   :  { %1739 = vst.msk [vmem:[#allocation3 + $0x6] sm:$0x1] %vm429_vm8, %v1737_v4 }
0x187a   :  { %1740 = vst.msk [vmem:[#allocation3 + $0xd] sm:$0x2] %vm431_vm9, %v1737_v4  ;;  %645 = vrot.lane.b32.xlu1 %v3334_v10, %s3046_s3 }
0x187c   :  { %v1965_v5 = vpop.permute.xlu0 %1964 }
0x187d   :  { %1967 = vst.msk [vmem:[#allocation16 - $0x6] sm:$0xc0] %vm980_vm7, %v1965_v5 }
0x187e   :  { %1085 = vrot.lane.b32.xlu1 %v3418_v40, %s3046_s3 }
0x1882   :  { %1517 = vrot.lane.b32.xlu1 %v3500_v6, %s3046_s3 }
0x18e8   :  { %v1947_v10 = vpop.permute.xlu1 %1946 }
0x18e9   :  { %v1949_v37 = vmul.f32 %v2846_v60, %v1947_v10 }
0x18eb   :  { %1951 = vrot.lane.b32.xlu0 %v1949_v37, %s3045_s15  ;;  %1955 = vrot.lane.b32.xlu1 %v1949_v37, %s3046_s3 }
0x18ec   :  { %v646_v40 = vpop.permute.xlu1 %645 }
0x18ed   :  { %648 = vst.msk [vmem:[#allocation3 + $0x1] sm:$0x1] %vm429_vm8, %v646_v40 }
0x18ee   :  { %649 = vst.msk [vmem:[#allocation3 + $0x8] sm:$0x2] %vm431_vm9, %v646_v40 }
0x18ef   :  { %1969 = vrot.lane.b32.xlu1 %v1943_v2, %s3047_s5 }
0x18f0   :  { %v1086_v6 = vpop.permute.xlu1 %1085 }
0x18f1   :  { %1088 = vst.msk [vmem:[#allocation3 + $0x3] sm:$0x1] %vm429_vm8, %v1086_v6 }
0x18f2   :  { %1089 = vst.msk [vmem:[#allocation3 + $0xa] sm:$0x2] %vm431_vm9, %v1086_v6 }
0x18f4   :  { %v1518_v16 = vpop.permute.xlu1 %1517 }
0x18f5   :  { %1520 = vst.msk [vmem:[#allocation3 + $0x5] sm:$0x1] %vm429_vm8, %v1518_v16 }
0x18f6   :  { %1521 = vst.msk [vmem:[#allocation3 + $0xc] sm:$0x2] %vm431_vm9, %v1518_v16 }
0x195d   :  { %v1952_v1 = vpop.permute.xlu0 %1951  ;;  %v1956_v17 = vpop.permute.xlu1 %1955 }
0x195e   :  { %1954 = vst.msk [vmem:[#allocation2] sm:$0x3] %vm216_vm2, %v1952_v1 }
0x195f   :  { %1958 = vst.msk [vmem:[#allocation3 + $0x7] sm:$0x1] %vm429_vm8, %v1956_v17 }
0x1960   :  { %1959 = vst.msk [vmem:[#allocation3 + $0xe] sm:$0x2] %vm431_vm9, %v1956_v17 }
0x1961   :  { %1962 = vst.msk [vmem:[#allocation14 + $0x2] sm:$0x3] %vm320_vm3, %v1956_v17  ;;  %v1970_v18 = vpop.permute.xlu1 %1969 }
0x1962   :  { %1973 = vst.msk [vmem:[#allocation16 + $0x2] sm:$0x3] %vm320_vm3, %v1970_v18 }
0x1966   :  { %v1974_v20 = vld [vmem:[#allocation3] sm:$0xff] }
0x1967   :  { %v1975_v39 = vld [vmem:[#allocation3 + $0x8] sm:$0xff]  ;;  %2541 = vmatprep.mubr.msk.f32.mxu0 %vm115_vm1, %v1974_v20 }
0x1968   :  { %2542 = vmatmul.mubr.msk.f32.vlgmr.msra.gmra.mrb[16].mxu0 %vm115_vm1, %v1975_v39 }
0x1969   :  { %2970 = shalt.err (!%p2967_p2)
}
0x196a   :  { %s2971_s20 = scalar_lea.hbm %s3634_s9, 64 }
0x196b   :  { %p2972_p3 = scmp.ne.s32.totalorder %s3634_s9, %s2971_s20  ;;  %p2975_p4 = scmp.lt.u32.totalorder %s2971_s20, %s3634_s9 }
0x196d   :  { %p2977_p5 = pnand %p2975_p4, %p2972_p3 }
0x196f   :  { %2980 = shalt.err (!%p2977_p5)
}
0x1970   :  { %s3049_s29 = smov 2   ;;  %s3050_s4 = smov [#allocation16]  }
0x1971   :  { %2093 = dma.vmem_to_hbm [thread:$0]  %s2088_s14, 64, %s3634_s9, [#allocation15], %s3046_s3, %s3046_s3, %s3049_s29  }
0x1972   :  { %s2099_s16 = sshll.u32 %s3050_s4, 4  ;;  %s2100_s16 = int_to_ptr.vmem [resolvable:$true] %s2099_s16 }
0x1973   :  { %s2981_s12 = scalar_lea.vmem %s2100_s16, 64  ;;  %p2986_p7 = scmp.lt.s32.totalorder %s2100_s16, %s2100_s16 }
0x1974   :  { %p2982_p6 = scmp.ne.s32.totalorder %s2100_s16, %s2981_s12  ;;  %p2987_p8 = scmp.lt.s32.totalorder %s2981_s12, %s2981_s12 }
0x1976   :  { %p2988_p9 = por %p2987_p8, %p2986_p7 }
0x1978   :  { %p2989_p10 = pnand %p2988_p9, %p2982_p6 }
0x197a   :  { %2992 = shalt.err (!%p2989_p10)
}
0x197b   :  { %s2993_s6 = scalar_lea.hbm %s3635_s10, 64 }
0x197c   :  { %p2994_p11 = scmp.ne.s32.totalorder %s3635_s10, %s2993_s6  ;;  %p2997_p12 = scmp.lt.u32.totalorder %s2993_s6, %s3635_s10 }
0x197e   :  { %p2999_p13 = pnand %p2997_p12, %p2994_p11 }
0x1980   :  { %3002 = shalt.err (!%p2999_p13)
}
0x1981   :  { %2105 = dma.vmem_to_hbm [thread:$0]  %s2100_s16, 64, %s3635_s10, [#allocation15], %s3046_s3, %s3046_s3, %s3049_s29  }
0x1982   :  { %v2155_v21 = vld [vmem:[%s3632_s7] ss:$0 sm:$0xff]  ;;  %s3051_s19 = smov [#allocation13]  }
0x1983   :  { %s2075_s21 = sshll.u32 %s3051_s19, 4  ;;  %s2076_s21 = int_to_ptr.vmem [resolvable:$true] %s2075_s21 }
0x1984   :  { %s3003_s0 = scalar_lea.vmem %s2076_s21, 256  ;;  %p3008_p1 = scmp.lt.s32.totalorder %s2076_s21, %s2076_s21 }
0x1985   :  { %p3004_p0 = scmp.ne.s32.totalorder %s2076_s21, %s3003_s0  ;;  %p3009_p2 = scmp.lt.s32.totalorder %s3003_s0, %s3003_s0 }
0x1987   :  { %p3010_p3 = por %p3009_p2, %p3008_p1 }
0x1989   :  { %p3011_p4 = pnand %p3010_p3, %p3004_p0 }
0x1a3b   :  { %v2543_v0 = vpop.f32.mrb[16].mxu0 }
0x1a3c   :  { %v2065_v43 = vadd.f32 %v2543_v0, %v2155_v21  ;;  %v2059_v46 = vpop.f32.mrb[17].mxu0 }
0x1a3d   :  { %v2060_v23 = vadd.f32 %v2155_v21, %v2059_v46 }
0x1a3e   :  { %2069 = vst.msk [vmem:[#allocation13 + $0x8] sm:$0xff] %vm323_vm4, %v2065_v43 }
0x1a3f   :  { %2068 = vst.msk [vmem:[#allocation13] sm:$0xff] %vm323_vm4, %v2060_v23 }
0x1a40   :  { %3014 = shalt.err (!%p3011_p4)
}
0x1a41   :  { %s3015_s3 = scalar_lea.hbm %s3633_s8, 256 }
0x1a42   :  { %p3016_p5 = scmp.ne.s32.totalorder %s3633_s8, %s3015_s3  ;;  %p3019_p6 = scmp.lt.u32.totalorder %s3015_s3, %s3633_s8 }
0x1a44   :  { %p3021_p7 = pnand %p3019_p6, %p3016_p5 }
0x1a46   :  { %3024 = shalt.err (!%p3021_p7)
}
0x1a47   :  { %2081 = dma.vmem_to_hbm [thread:$0]  %s2076_s21, 256, %s3633_s8, [#allocation6], %s3037_s25, %s3037_s25, %s3038_s26  }
0x1a48   :  { %3031 = dma.done.wait [#allocation6], 256  }
0x1a49   :  { %3032 = vsyncadd [#allocation6], 4294967040 }
0x1a4a   :  { %3033 = dma.done.wait [#allocation15], 128  }
0x1a4b   :  { %3034 = vsyncadd [#allocation15], 4294967168 }
0x1a4c   :  { %2115 = vsyncpa [#allocation5], 1 }
0x1a4d   :  { %2116 = vsyncpa [#allocation8], 1 }
0x1a4e   :  { %2117 = vsyncpa [#allocation11], 1 }
0x1a4f   :  { %2118 = vsyncpa [#allocation6], 1 }
0x1a50   :  { %2119 = vsyncpa [#allocation15], 1 }

</bundles_post_ra>
